<compile_context>
chip_gen: v7x
topology: tpu7x:2x2x1
jax: 0.10.0
libtpu: 0.0.40
codegen_flags: <defaults>
</compile_context>

<pallas_src>
import functools

import jax
import jax.numpy as jnp
from jax.experimental import pallas as pl
from jax.experimental.pallas import tpu as pltpu


# ------------------------------ small helpers -------------------------------

def _round_up(x, m):
    return ((x + m - 1) // m) * m


def _pad2d(a, rows, cols):
    """Zero-pad a 2-D array up to (rows, cols)."""
    out = jnp.zeros((rows, cols), a.dtype)
    return out.at[: a.shape[0], : a.shape[1]].set(a)


def _conv_out(hw, k, s, p):
    return (hw + 2 * p - k) // s + 1


def _avgpool2x2(x_nhwc):
    """ResizeSpatial: 2x2 / stride-2 average pool (plain-JAX form, init only)."""
    return (x_nhwc[:, ::2, ::2] + x_nhwc[:, 1::2, ::2]
            + x_nhwc[:, ::2, 1::2] + x_nhwc[:, 1::2, 1::2]) * 0.25


def _conv2d_nhwc(x_nhwc, w_oihw, stride, pad):
    """Bias-free conv2d with PyTorch OIHW weights on an NHWC input (init only)."""
    w_hwio = jnp.transpose(w_oihw, (2, 3, 1, 0))
    return jax.lax.conv_general_dilated(
        x_nhwc, w_hwio,
        window_strides=(stride, stride),
        padding=((pad, pad), (pad, pad)),
        dimension_numbers=("NHWC", "HWIO", "NHWC"),
        precision=jax.lax.Precision.HIGHEST)


# ------------------------------ Pallas kernel --------------------------------

def _fused_policy_kernel(x_ref, lang_ref,
                         a1_ref, b1_ref, a2_ref, b2_ref, a3_ref, b3_ref,
                         w4a_ref, w4b_ref, b4_ref, w5_ref, b5_ref,
                         o_ref):
    """Entire forward pass, all operands VMEM-resident; 6 MXU matmuls.

    ReLUs and bias adds ride the VPU (free under the MXU/DMA bound); the
    (1, N) biases sublane-broadcast on the XLU, also off the critical slot.
    """
    f32 = jnp.float32
    # Encoder: pool + conv1, conv2, conv3 folded into dense matrices.
    h = jnp.dot(x_ref[...], a1_ref[...], preferred_element_type=f32) + b1_ref[...]
    h = jnp.maximum(h, 0.0)
    h = jnp.dot(h, a2_ref[...], preferred_element_type=f32) + b2_ref[...]
    h = jnp.maximum(h, 0.0)
    h = jnp.dot(h, a3_ref[...], preferred_element_type=f32) + b3_ref[...]
    h = jnp.maximum(h, 0.0)
    # policy_net on concat(image_feat, lang): the concat is expressed as two
    # matmuls on the split first-layer weight (no lane concat needed).
    h = (jnp.dot(h, w4a_ref[...], preferred_element_type=f32)
         + jnp.dot(lang_ref[...], w4b_ref[...], preferred_element_type=f32)
         + b4_ref[...])
    h = jnp.maximum(h, 0.0)
    o_ref[...] = jnp.dot(h, w5_ref[...], preferred_element_type=f32) + b5_ref[...]


# --------------------------- parameters & folding ----------------------------

def init_params(key, in_ch=4, lang_dim=32, feat_dim=64, hidden=64, act_dim=8):
    """Synthesized Encoder / policy_net hyper-parameters (PyTorch layout)."""
    ks = jax.random.split(key, 10)

    def w(k, shape, fan_in):
        return jax.random.normal(k, shape, jnp.float32) / jnp.sqrt(fan_in)

    return {
        # Encoder: 3 convs (stride 2) driving 8x8 -> 4x4 -> 2x2 -> 1x1
        "cw1": w(ks[0], (32, in_ch, 3, 3), in_ch * 9),
        "cb1": jnp.zeros((32,), jnp.float32),
        "cw2": w(ks[1], (64, 32, 3, 3), 32 * 9),
        "cb2": jnp.zeros((64,), jnp.float32),
        "cw3": w(ks[2], (feat_dim, 64, 2, 2), 64 * 4),
        "cb3": jnp.zeros((feat_dim,), jnp.float32),
        # policy_net MLP: (feat + lang) -> hidden -> act
        "pw1": w(ks[3], (feat_dim + lang_dim, hidden), feat_dim + lang_dim),
        "pb1": jnp.zeros((hidden,), jnp.float32),
        "pw2": w(ks[4], (hidden, act_dim), hidden),
        "pb2": jnp.zeros((act_dim,), jnp.float32),
    }


def build_fused_params(params, *, in_ch, res):
    """Fold pool + conv stack + MLP into lane-dense dense matrices (run ONCE).

    Each conv layer is a linear map from its NHWC-flattened input to its
    NHWC-flattened output, so its matrix is obtained exactly by pushing an
    identity basis through the bias-free layer.  The NCHW->NHWC permutation
    and the 2x2 average pool are folded into the first matrix.  Everything is
    zero-padded to multiples of 128 (lane dim) so every in-kernel matmul and
    the final store are unmasked and lane-dense.
    """
    f32 = jnp.float32
    cw1, cb1 = params["cw1"], params["cb1"]
    cw2, cb2 = params["cw2"], params["cb2"]
    cw3, cb3 = params["cw3"], params["cb3"]
    pw1, pb1 = params["pw1"], params["pb1"]
    pw2, pb2 = params["pw2"], params["pb2"]

    rp = res // 2                                   # after ResizeSpatial
    r1 = _conv_out(rp, cw1.shape[2], 2, 1)
    r2 = _conv_out(r1, cw2.shape[2], 2, 1)
    r3 = _conv_out(r2, cw3.shape[2], 2, 0)
    c1, c2, c3 = cw1.shape[0], cw2.shape[0], cw3.shape[0]

    d0 = in_ch * res * res                          # NCHW-flat input width
    d1, d2, d3 = r1 * r1 * c1, r2 * r2 * c2, r3 * r3 * c3

    def s1(xflat):  # NCHW-flat -> NHWC -> pool -> conv1 (no bias), flattened
        n = xflat.shape[0]
        x = xflat.reshape(n, in_ch, res, res).transpose(0, 2, 3, 1)
        x = _avgpool2x2(x)
        return _conv2d_nhwc(x, cw1, 2, 1).reshape(n, -1)

    def s2(hflat):
        n = hflat.shape[0]
        return _conv2d_nhwc(hflat.reshape(n, r1, r1, c1), cw2, 2, 1).reshape(n, -1)

    def s3(hflat):
        n = hflat.shape[0]
        return _conv2d_nhwc(hflat.reshape(n, r2, r2, c2), cw3, 2, 0).reshape(n, -1)

    a1 = s1(jnp.eye(d0, dtype=f32))                 # [d0, d1]
    a2 = s2(jnp.eye(d1, dtype=f32))                 # [d1, d2]
    a3 = s3(jnp.eye(d2, dtype=f32))                 # [d2, d3]

    b1 = jnp.tile(cb1, r1 * r1)[None, :]            # NHWC flat: channel minor
    b2 = jnp.tile(cb2, r2 * r2)[None, :]
    b3 = jnp.tile(cb3, r3 * r3)[None, :]

    feat_dim = d3
    lang_dim = pw1.shape[0] - feat_dim
    hidden = pw1.shape[1]
    act_dim = pw2.shape[1]

    d0p, d1p, d2p, d3p = (_round_up(d, 128) for d in (d0, d1, d2, d3))
    nlp = _round_up(lang_dim, 128)
    nhp = _round_up(hidden, 128)
    nap = _round_up(act_dim, 128)

    return {
        "a1": _pad2d(a1, d0p, d1p), "b1": _pad2d(b1, 1, d1p),
        "a2": _pad2d(a2, d1p, d2p), "b2": _pad2d(b2, 1, d2p),
        "a3": _pad2d(a3, d2p, d3p), "b3": _pad2d(b3, 1, d3p),
        "w4a": _pad2d(pw1[:feat_dim, :], d3p, nhp),   # image-feature block
        "w4b": _pad2d(pw1[feat_dim:, :], nlp, nhp),   # language block
        "b4": _pad2d(pb1[None, :], 1, nhp),
        "w5": _pad2d(pw2, nhp, nap),
        "b5": _pad2d(pb2[None, :], 1, nap),
    }


# ------------------------------ forward pass ---------------------------------

def lang_conditioned_policy_forward(fused, images_nchw, lang, *, act_dim):
    # lang: if 3-D [B, T, D] take the first token, like the reference module.
    if lang.ndim == 3:
        lang = lang[:, 0]
    lang = lang.astype(jnp.float32)

    b = images_nchw.shape[0]
    d0p, d1p = fused["a1"].shape
    d2p = fused["a2"].shape[1]
    d3p, nhp = fused["w4a"].shape
    nlp = fused["w4b"].shape[0]
    nap = fused["w5"].shape[1]
    m = max(8, _round_up(b, 8))                     # sublane-aligned row count

    # NCHW flatten is a free reshape (the NCHW->NHWC permutation is folded into
    # a1).  Pad rows to 8 and lanes to multiples of 128 so every in-kernel
    # load/store is a full unmasked vreg; padding is sliced off below.
    x = images_nchw.astype(jnp.float32).reshape(b, -1)
    x = jnp.pad(x, ((0, m - b), (0, d0p - x.shape[1])))
    l = jnp.pad(lang, ((0, m - b), (0, nlp - lang.shape[1])))

    operands = (x, l,
                fused["a1"], fused["b1"], fused["a2"], fused["b2"],
                fused["a3"], fused["b3"], fused["w4a"], fused["w4b"],
                fused["b4"], fused["w5"], fused["b5"])

    flops = 2 * m * (d0p * d1p + d1p * d2p + d2p * d3p
                     + d3p * nhp + nlp * nhp + nhp * nap)
    bytes_accessed = sum(int(a.size) * a.dtype.itemsize for a in operands) \
        + m * nap * 4
    cost = pl.CostEstimate(flops=flops, transcendentals=0,
                           bytes_accessed=bytes_accessed)

    out = pl.pallas_call(
        _fused_policy_kernel,
        out_shape=jax.ShapeDtypeStruct((m, nap), jnp.float32),
        in_specs=[pl.BlockSpec(memory_space=pltpu.MemorySpace.VMEM)] * len(operands),
        out_specs=pl.BlockSpec(memory_space=pltpu.MemorySpace.VMEM),
        cost_estimate=cost,
    )(*operands)
    return out[:b, :act_dim]


# ----------------------- pure-JAX reference (self-check) ---------------------

def reference_forward(params, images_nchw, lang):
    """Mirrors the PyTorch module op-for-op (pool -> convs -> concat -> MLP)."""
    if lang.ndim == 3:
        lang = lang[:, 0]
    lang = lang.astype(jnp.float32)
    hi = jax.lax.Precision.HIGHEST
    x = jnp.transpose(images_nchw, (0, 2, 3, 1)).astype(jnp.float32)
    x = _avgpool2x2(x)
    x = jax.nn.relu(_conv2d_nhwc(x, params["cw1"], 2, 1) + params["cb1"])
    x = jax.nn.relu(_conv2d_nhwc(x, params["cw2"], 2, 1) + params["cb2"])
    x = jax.nn.relu(_conv2d_nhwc(x, params["cw3"], 2, 0) + params["cb3"])
    feat = x.reshape(x.shape[0], -1)
    inp = jnp.concatenate([feat, lang], axis=-1)
    h = jax.nn.relu(jnp.dot(inp, params["pw1"], precision=hi) + params["pb1"])
    return jnp.dot(h, params["pw2"], precision=hi) + params["pb2"]


# ---------------------------------- main --------------------------------------

if __name__ == "__main__":
    key = jax.random.PRNGKey(0)
    k_img, k_lang, k_par = jax.random.split(key, 3)

    batch, in_ch, res = 2, 4, 16
    lang_tokens, lang_dim = 3, 32
    act_dim = 8

    images = jax.random.normal(k_img, (batch, in_ch, res, res), jnp.float32)  # NCHW
    lang = jax.random.normal(k_lang, (batch, lang_tokens, lang_dim), jnp.float32)

    params = init_params(k_par, in_ch=in_ch, lang_dim=lang_dim,
                         feat_dim=64, hidden=64, act_dim=act_dim)
    fused = build_fused_params(params, in_ch=in_ch, res=res)   # once, at init

    fwd = jax.jit(functools.partial(lang_conditioned_policy_forward,
                                    act_dim=act_dim))
    out = fwd(fused, images, lang)
    jax.block_until_ready(out)

    assert out.shape == (batch, act_dim), out.shape
    assert out.dtype == jnp.float32

    ref = reference_forward(params, images, lang)
    max_err = float(jnp.max(jnp.abs(out - ref)))
    assert max_err < 2e-2, f"kernel/reference mismatch: max_err={max_err}"

    print("KERNEL_OK")
</pallas_src>

<mosaic_0001>
module attributes {stable_mosaic.version = 11 : i64} {
  func.func @_fused_policy_kernel(%arg0: memref<8x1024xf32, #tpu.memory_space<vmem>>, %arg1: memref<8x128xf32, #tpu.memory_space<vmem>>, %arg2: memref<1024x512xf32, #tpu.memory_space<vmem>>, %arg3: memref<1x512xf32, #tpu.memory_space<vmem>>, %arg4: memref<512x256xf32, #tpu.memory_space<vmem>>, %arg5: memref<1x256xf32, #tpu.memory_space<vmem>>, %arg6: memref<256x128xf32, #tpu.memory_space<vmem>>, %arg7: memref<1x128xf32, #tpu.memory_space<vmem>>, %arg8: memref<128x128xf32, #tpu.memory_space<vmem>>, %arg9: memref<128x128xf32, #tpu.memory_space<vmem>>, %arg10: memref<1x128xf32, #tpu.memory_space<vmem>>, %arg11: memref<128x128xf32, #tpu.memory_space<vmem>>, %arg12: memref<1x128xf32, #tpu.memory_space<vmem>>, %arg13: memref<8x128xf32, #tpu.memory_space<vmem>>) attributes {dimension_semantics = [], scalar_prefetch = 0 : i64, scratch_operands = 0 : i64, tpu.core_type = #tpu.core_type<tc>} {
    %c0 = arith.constant 0 : index
    %c0_0 = arith.constant 0 : index
    %0 = vector.load %arg0[%c0, %c0_0] : memref<8x1024xf32, #tpu.memory_space<vmem>>, vector<8x1024xf32>
    %c0_1 = arith.constant 0 : index
    %c0_2 = arith.constant 0 : index
    %1 = vector.load %arg2[%c0_1, %c0_2] : memref<1024x512xf32, #tpu.memory_space<vmem>>, vector<1024x512xf32>
    %cst = arith.constant dense<0.000000e+00> : vector<8x512xf32>
    %2 = tpu.matmul %0, %1, %cst {dimension_numbers = #tpu.dot_dimension_numbers<[1], [0], [0], [1], [0, 0, 1, 1], [], []>} : vector<8x1024xf32>, vector<1024x512xf32>, vector<8x512xf32> -> vector<8x512xf32>
    %c0_3 = arith.constant 0 : index
    %c0_4 = arith.constant 0 : index
    %3 = vector.load %arg3[%c0_3, %c0_4] : memref<1x512xf32, #tpu.memory_space<vmem>>, vector<1x512xf32>
    %4 = vector.broadcast %3 : vector<1x512xf32> to vector<8x512xf32>
    %5 = arith.addf %2, %4 : vector<8x512xf32>
    %cst_5 = arith.constant 0.000000e+00 : f32
    %6 = vector.broadcast %cst_5 : f32 to vector<8x512xf32>
    %7 = arith.maximumf %5, %6 : vector<8x512xf32>
    %c0_6 = arith.constant 0 : index
    %c0_7 = arith.constant 0 : index
    %8 = vector.load %arg4[%c0_6, %c0_7] : memref<512x256xf32, #tpu.memory_space<vmem>>, vector<512x256xf32>
    %cst_8 = arith.constant dense<0.000000e+00> : vector<8x256xf32>
    %9 = tpu.matmul %7, %8, %cst_8 {dimension_numbers = #tpu.dot_dimension_numbers<[1], [0], [0], [1], [0, 0, 1, 1], [], []>} : vector<8x512xf32>, vector<512x256xf32>, vector<8x256xf32> -> vector<8x256xf32>
    %c0_9 = arith.constant 0 : index
    %c0_10 = arith.constant 0 : index
    %10 = vector.load %arg5[%c0_9, %c0_10] : memref<1x256xf32, #tpu.memory_space<vmem>>, vector<1x256xf32>
    %11 = vector.broadcast %10 : vector<1x256xf32> to vector<8x256xf32>
    %12 = arith.addf %9, %11 : vector<8x256xf32>
    %cst_11 = arith.constant 0.000000e+00 : f32
    %13 = vector.broadcast %cst_11 : f32 to vector<8x256xf32>
    %14 = arith.maximumf %12, %13 : vector<8x256xf32>
    %c0_12 = arith.constant 0 : index
    %c0_13 = arith.constant 0 : index
    %15 = vector.load %arg6[%c0_12, %c0_13] : memref<256x128xf32, #tpu.memory_space<vmem>>, vector<256x128xf32>
    %cst_14 = arith.constant dense<0.000000e+00> : vector<8x128xf32>
    %16 = tpu.matmul %14, %15, %cst_14 {dimension_numbers = #tpu.dot_dimension_numbers<[1], [0], [0], [1], [0, 0, 1, 1], [], []>} : vector<8x256xf32>, vector<256x128xf32>, vector<8x128xf32> -> vector<8x128xf32>
    %c0_15 = arith.constant 0 : index
    %c0_16 = arith.constant 0 : index
    %17 = vector.load %arg7[%c0_15, %c0_16] : memref<1x128xf32, #tpu.memory_space<vmem>>, vector<1x128xf32>
    %18 = vector.broadcast %17 : vector<1x128xf32> to vector<8x128xf32>
    %19 = arith.addf %16, %18 : vector<8x128xf32>
    %cst_17 = arith.constant 0.000000e+00 : f32
    %20 = vector.broadcast %cst_17 : f32 to vector<8x128xf32>
    %21 = arith.maximumf %19, %20 : vector<8x128xf32>
    %c0_18 = arith.constant 0 : index
    %c0_19 = arith.constant 0 : index
    %22 = vector.load %arg8[%c0_18, %c0_19] : memref<128x128xf32, #tpu.memory_space<vmem>>, vector<128x128xf32>
    %cst_20 = arith.constant dense<0.000000e+00> : vector<8x128xf32>
    %23 = tpu.matmul %21, %22, %cst_20 {dimension_numbers = #tpu.dot_dimension_numbers<[1], [0], [0], [1], [0, 0, 1, 1], [], []>} : vector<8x128xf32>, vector<128x128xf32>, vector<8x128xf32> -> vector<8x128xf32>
    %c0_21 = arith.constant 0 : index
    %c0_22 = arith.constant 0 : index
    %24 = vector.load %arg1[%c0_21, %c0_22] : memref<8x128xf32, #tpu.memory_space<vmem>>, vector<8x128xf32>
    %c0_23 = arith.constant 0 : index
    %c0_24 = arith.constant 0 : index
    %25 = vector.load %arg9[%c0_23, %c0_24] : memref<128x128xf32, #tpu.memory_space<vmem>>, vector<128x128xf32>
    %cst_25 = arith.constant dense<0.000000e+00> : vector<8x128xf32>
    %26 = tpu.matmul %24, %25, %cst_25 {dimension_numbers = #tpu.dot_dimension_numbers<[1], [0], [0], [1], [0, 0, 1, 1], [], []>} : vector<8x128xf32>, vector<128x128xf32>, vector<8x128xf32> -> vector<8x128xf32>
    %27 = arith.addf %23, %26 : vector<8x128xf32>
    %c0_26 = arith.constant 0 : index
    %c0_27 = arith.constant 0 : index
    %28 = vector.load %arg10[%c0_26, %c0_27] : memref<1x128xf32, #tpu.memory_space<vmem>>, vector<1x128xf32>
    %29 = vector.broadcast %28 : vector<1x128xf32> to vector<8x128xf32>
    %30 = arith.addf %27, %29 : vector<8x128xf32>
    %cst_28 = arith.constant 0.000000e+00 : f32
    %31 = vector.broadcast %cst_28 : f32 to vector<8x128xf32>
    %32 = arith.maximumf %30, %31 : vector<8x128xf32>
    %c0_29 = arith.constant 0 : index
    %c0_30 = arith.constant 0 : index
    %33 = vector.load %arg11[%c0_29, %c0_30] : memref<128x128xf32, #tpu.memory_space<vmem>>, vector<128x128xf32>
    %cst_31 = arith.constant dense<0.000000e+00> : vector<8x128xf32>
    %34 = tpu.matmul %32, %33, %cst_31 {dimension_numbers = #tpu.dot_dimension_numbers<[1], [0], [0], [1], [0, 0, 1, 1], [], []>} : vector<8x128xf32>, vector<128x128xf32>, vector<8x128xf32> -> vector<8x128xf32>
    %c0_32 = arith.constant 0 : index
    %c0_33 = arith.constant 0 : index
    %35 = vector.load %arg12[%c0_32, %c0_33] : memref<1x128xf32, #tpu.memory_space<vmem>>, vector<1x128xf32>
    %36 = vector.broadcast %35 : vector<1x128xf32> to vector<8x128xf32>
    %37 = arith.addf %34, %36 : vector<8x128xf32>
    %c0_34 = arith.constant 0 : index
    %c0_35 = arith.constant 0 : index
    %38 = vector.load %arg13[%c0_34, %c0_35] : memref<8x128xf32, #tpu.memory_space<vmem>>, vector<8x128xf32>
    tpu.vector_store %arg13[%c0_34, %c0_35], %37 {strides = array<i32>} : memref<8x128xf32, #tpu.memory_space<vmem>>, vector<8x128xf32>,
    return
  }
}

</mosaic_0001>

<bundles_post_ra>
// kernel: lang_conditioned_policy_forward.1
= control target key start
LH: loop header
LB: loop body
LE: loop exit
PB: predicated region body
PF: predicated region fallthrough
CT: control target
= control target key end

     0   :  { %18 = vsyncpa [#allocation3], 0  ;;  %s3526_s0 = inlined_call_operand.vmem [shape: f32[8,1024], index: 0, kind: input, shape index: {}]   ;;  %s3527_s1 = inlined_call_operand.vmem [shape: f32[8,128], index: 1, kind: input, shape index: {}]   ;;  %s3528_s2 = inlined_call_operand.hbm [shape: f32[1024,512], index: 2, kind: input, shape index: {}]   ;;  %s3529_s3 = inlined_call_operand.hbm [shape: f32[1,512], index: 3, kind: input, shape index: {}]   ;;  %s3530_s4 = inlined_call_operand.hbm [shape: f32[512,256], index: 4, kind: input, shape index: {}]   ;;  %s3531_s5 = inlined_call_operand.hbm [shape: f32[1,256], index: 5, kind: input, shape index: {}]   ;;  %s3532_s6 = inlined_call_operand.hbm [shape: f32[256,128], index: 6, kind: input, shape index: {}]   ;;  %s3533_s7 = inlined_call_operand.hbm [shape: f32[1,128], index: 7, kind: input, shape index: {}]   ;;  %s3534_s8 = inlined_call_operand.hbm [shape: f32[128,128], index: 8, kind: input, shape index: {}]   ;;  %s3535_s9 = inlined_call_operand.hbm [shape: f32[128,128], index: 9, kind: input, shape index: {}]   ;;  %s3536_s10 = inlined_call_operand.hbm [shape: f32[1,128], index: 10, kind: input, shape index: {}]   ;;  %s3537_s11 = inlined_call_operand.hbm [shape: f32[128,128], index: 11, kind: input, shape index: {}]   ;;  %s3538_s12 = inlined_call_operand.hbm [shape: f32[1,128], index: 12, kind: input, shape index: {}]   ;;  %s3539_s13 = inlined_call_operand.vmem [shape: f32[8,128], index: 13, kind: output, shape index: {}]  }
   0x1   :  { %19 = vsyncpa [#allocation5], 0 }
   0x2   :  { %20 = vsyncpa [#allocation8], 0 }
   0x3   :  { %21 = vsyncpa [#allocation11], 0 }
   0x4   :  { %22 = vsyncpa [#allocation14], 0 }
   0x5   :  { %23 = vsyncpa [#allocation17], 0  ;;  %s3209_s25 = smov [#allocation4]   ;;  %s3210_s27 = smov [#allocation7]  }
   0x6   :  { %s46_s26 = sshll.u32 %s3209_s25, 4  ;;  %s68_s28 = sshll.u32 %s3210_s27, 4  ;;  %s47_s26 = int_to_ptr.vmem [resolvable:$true] %s46_s26  ;;  %s69_s28 = int_to_ptr.vmem [resolvable:$true] %s68_s28 }
   0x7   :  { %s2955_s14 = scalar_lea.hbm %s3529_s3, 64 }
   0x8   :  { %p2956_p0 = scmp.ne.s32.totalorder %s3529_s3, %s2955_s14  ;;  %p2959_p1 = scmp.lt.u32.totalorder %s2955_s14, %s3529_s3 }
   0xa   :  { %p2961_p2 = pnand %p2959_p1, %p2956_p0 }
   0xc   :  { %2964 = shalt.err (!%p2961_p2)
}
   0xd   :  { %s2965_s19 = scalar_lea.vmem %s47_s26, 64  ;;  %p2970_p4 = scmp.lt.s32.totalorder %s47_s26, %s47_s26 }
   0xe   :  { %p2966_p3 = scmp.ne.s32.totalorder %s47_s26, %s2965_s19  ;;  %p2971_p5 = scmp.lt.s32.totalorder %s2965_s19, %s2965_s19 }
  0x10   :  { %p2972_p6 = por %p2971_p5, %p2970_p4 }
  0x12   :  { %p2973_p7 = pnand %p2972_p6, %p2966_p3 }
  0x14   :  { %2976 = shalt.err (!%p2973_p7)
}
  0x15   :  { %49 = dma.hbm_to_vmem [thread:$0]  %s3529_s3, 64, %s47_s26, [#allocation5]  }
  0x16   :  { %s2977_s24 = scalar_lea.hbm %s3531_s5, 32 }
  0x17   :  { %p2978_p8 = scmp.ne.s32.totalorder %s3531_s5, %s2977_s24  ;;  %p2981_p9 = scmp.lt.u32.totalorder %s2977_s24, %s3531_s5 }
  0x19   :  { %p2983_p10 = pnand %p2981_p9, %p2978_p8 }
  0x1b   :  { %2986 = shalt.err (!%p2983_p10)
}
  0x1c   :  { %s2987_s14 = scalar_lea.vmem %s69_s28, 32  ;;  %p2992_p12 = scmp.lt.s32.totalorder %s69_s28, %s69_s28 }
  0x1d   :  { %p2988_p11 = scmp.ne.s32.totalorder %s69_s28, %s2987_s14  ;;  %p2993_p13 = scmp.lt.s32.totalorder %s2987_s14, %s2987_s14 }
  0x1f   :  { %p2994_p0 = por %p2993_p13, %p2992_p12 }
  0x21   :  { %p2995_p1 = pnand %p2994_p0, %p2988_p11 }
  0x23   :  { %2998 = shalt.err (!%p2995_p1)
}
  0x24   :  { %71 = dma.hbm_to_vmem [thread:$0]  %s3531_s5, 32, %s69_s28, [#allocation8]  }
  0x25   :  { %s3211_s15 = smov [#allocation10]   ;;  %s2999_s19 = scalar_lea.hbm %s3533_s7, 16 }
  0x26   :  { %s90_s16 = sshll.u32 %s3211_s15, 4  ;;  %p3000_p2 = scmp.ne.s32.totalorder %s3533_s7, %s2999_s19  ;;  %s91_s16 = int_to_ptr.vmem [resolvable:$true] %s90_s16 }
  0x27   :  { %p3003_p3 = scmp.lt.u32.totalorder %s2999_s19, %s3533_s7 }
  0x29   :  { %p3005_p4 = pnand %p3003_p3, %p3000_p2 }
  0x2b   :  { %3008 = shalt.err (!%p3005_p4)
}
  0x2c   :  { %s3009_s24 = scalar_lea.vmem %s91_s16, 16  ;;  %s3013_s5 = scalar_lea.vmem %s91_s16, 32 }
  0x2d   :  { %p3010_p5 = scmp.ne.s32.totalorder %s91_s16, %s3009_s24  ;;  %p3014_p6 = scmp.lt.s32.totalorder %s91_s16, %s91_s16 }
  0x2e   :  { %p3015_p7 = scmp.lt.s32.totalorder %s3013_s5, %s3009_s24 }
  0x30   :  { %p3016_p8 = por %p3015_p7, %p3014_p6 }
  0x32   :  { %p3017_p9 = pnand %p3016_p8, %p3010_p5 }
  0x34   :  { %3020 = shalt.err (!%p3017_p9)
}
  0x35   :  { %93 = dma.hbm_to_vmem [thread:$0]  %s3533_s7, 16, %s91_s16, [#allocation11]  }
  0x36   :  { %s3212_s27 = smov [#allocation13]   ;;  %s3213_s30 = smov [#allocation16]  }
  0x37   :  { %s111_s29 = sshll.u32 %s3212_s27, 4  ;;  %s133_s14 = sshll.u32 %s3213_s30, 4  ;;  %s112_s29 = int_to_ptr.vmem [resolvable:$true] %s111_s29  ;;  %s134_s14 = int_to_ptr.vmem [resolvable:$true] %s133_s14 }
  0x38   :  { %s3021_s15 = scalar_lea.hbm %s3535_s9, 2048 }
  0x39   :  { %p3022_p10 = scmp.ne.s32.totalorder %s3535_s9, %s3021_s15  ;;  %p3025_p11 = scmp.lt.u32.totalorder %s3021_s15, %s3535_s9 }
  0x3b   :  { %p3027_p12 = pnand %p3025_p11, %p3022_p10 }
  0x3d   :  { %3030 = shalt.err (!%p3027_p12)
}
  0x3e   :  { %s3031_s7 = scalar_lea.vmem %s112_s29, 2048  ;;  %p3036_p0 = scmp.lt.s32.totalorder %s112_s29, %s112_s29 }
  0x3f   :  { %p3032_p13 = scmp.ne.s32.totalorder %s112_s29, %s3031_s7  ;;  %p3037_p1 = scmp.lt.s32.totalorder %s3031_s7, %s3031_s7 }
  0x41   :  { %p3038_p2 = por %p3037_p1, %p3036_p0 }
  0x43   :  { %p3039_p3 = pnand %p3038_p2, %p3032_p13 }
  0x45   :  { %3042 = shalt.err (!%p3039_p3)
}
  0x46   :  { %s3214_s16 = smov 128   ;;  %s3215_s21 = smov 8  }
  0x47   :  { %117 = dma.hbm_to_vmem [thread:$0]  %s3535_s9, 2048, %s112_s29, [#allocation14], %s3214_s16, %s3214_s16, %s3215_s21  }
  0x48   :  { %s3043_s28 = scalar_lea.hbm %s3537_s11, 2048 }
  0x49   :  { %p3044_p4 = scmp.ne.s32.totalorder %s3537_s11, %s3043_s28  ;;  %p3047_p5 = scmp.lt.u32.totalorder %s3043_s28, %s3537_s11 }
  0x4b   :  { %p3049_p6 = pnand %p3047_p5, %p3044_p4 }
  0x4d   :  { %3052 = shalt.err (!%p3049_p6)
}
  0x4e   :  { %s3053_s26 = scalar_lea.vmem %s134_s14, 2048  ;;  %p3058_p8 = scmp.lt.s32.totalorder %s134_s14, %s134_s14 }
  0x4f   :  { %p3054_p7 = scmp.ne.s32.totalorder %s134_s14, %s3053_s26  ;;  %p3059_p9 = scmp.lt.s32.totalorder %s3053_s26, %s3053_s26 }
  0x51   :  { %p3060_p10 = por %p3059_p9, %p3058_p8 }
  0x53   :  { %p3061_p11 = pnand %p3060_p10, %p3054_p7 }
  0x55   :  { %3064 = shalt.err (!%p3061_p11)
}
  0x56   :  { %139 = dma.hbm_to_vmem [thread:$0]  %s3537_s11, 2048, %s134_s14, [#allocation17], %s3214_s16, %s3214_s16, %s3215_s21  }
  0x57   :  { %s3216_s15 = smov [#allocation2]   ;;  %s3065_s20 = scalar_lea.hbm %s3528_s2, 65536 }
  0x58   :  { %s33_s17 = sshll.u32 %s3216_s15, 4  ;;  %p3066_p12 = scmp.ne.s32.totalorder %s3528_s2, %s3065_s20  ;;  %s34_s17 = int_to_ptr.vmem [resolvable:$true] %s33_s17 }
  0x59   :  { %p3069_p13 = scmp.lt.u32.totalorder %s3065_s20, %s3528_s2 }
  0x5b   :  { %p3071_p0 = pnand %p3069_p13, %p3066_p12 }
  0x5d   :  { %3074 = shalt.err (!%p3071_p0)
}
  0x5e   :  { %s3075_s5 = scalar_lea.vmem %s34_s17, 65536  ;;  %p3080_p2 = scmp.lt.s32.totalorder %s34_s17, %s34_s17 }
  0x5f   :  { %p3076_p1 = scmp.ne.s32.totalorder %s34_s17, %s3075_s5  ;;  %p3081_p3 = scmp.lt.s32.totalorder %s3075_s5, %s3075_s5 }
  0x61   :  { %p3082_p4 = por %p3081_p3, %p3080_p2 }
  0x63   :  { %p3083_p5 = pnand %p3082_p4, %p3076_p1 }
  0x65   :  { %3086 = shalt.err (!%p3083_p5)
}
  0x66   :  { %s3217_s11 = smov 512   ;;  %s3218_s14 = smov 32  }
  0x67   :  { %39 = dma.hbm_to_vmem [thread:$0]  %s3528_s2, 65536, %s34_s17, [#allocation3], %s3217_s11, %s3217_s11, %s3218_s14  }
  0x68   :  { %s3219_s27 = smov [#allocation6]   ;;  %s3087_s9 = scalar_lea.hbm %s3530_s4, 16384 }
  0x69   :  { %s55_s30 = sshll.u32 %s3219_s27, 4  ;;  %p3088_p6 = scmp.ne.s32.totalorder %s3530_s4, %s3087_s9  ;;  %s56_s30 = int_to_ptr.vmem [resolvable:$true] %s55_s30 }
  0x6a   :  { %p3091_p7 = scmp.lt.u32.totalorder %s3087_s9, %s3530_s4 }
  0x6c   :  { %p3093_p8 = pnand %p3091_p7, %p3088_p6 }
  0x6e   :  { %3096 = shalt.err (!%p3093_p8)
}
  0x6f   :  { %s3097_s20 = scalar_lea.vmem %s56_s30, 16384  ;;  %p3102_p10 = scmp.lt.s32.totalorder %s56_s30, %s56_s30 }
  0x70   :  { %p3098_p9 = scmp.ne.s32.totalorder %s56_s30, %s3097_s20  ;;  %p3103_p11 = scmp.lt.s32.totalorder %s3097_s20, %s3097_s20 }
  0x72   :  { %p3104_p12 = por %p3103_p11, %p3102_p10 }
  0x74   :  { %p3105_p13 = pnand %p3104_p12, %p3098_p9 }
  0x76   :  { %3108 = shalt.err (!%p3105_p13)
}
  0x77   :  { %s3220_s2 = smov 256   ;;  %s3221_s17 = smov 16  }
  0x78   :  { %61 = dma.hbm_to_vmem [thread:$0]  %s3530_s4, 16384, %s56_s30, [#allocation5], %s3220_s2, %s3220_s2, %s3221_s17  }
  0x79   :  { %s3222_s23 = smov [#allocation9]   ;;  %s3223_s5 = smov [#allocation12]  }
  0x7a   :  { %s77_s24 = sshll.u32 %s3222_s23, 4  ;;  %s99_s11 = sshll.u32 %s3223_s5, 4  ;;  %s78_s24 = int_to_ptr.vmem [resolvable:$true] %s77_s24  ;;  %s100_s11 = int_to_ptr.vmem [resolvable:$true] %s99_s11 }
  0x7b   :  { %s3109_s25 = scalar_lea.hbm %s3532_s6, 4096 }
  0x7c   :  { %p3110_p0 = scmp.ne.s32.totalorder %s3532_s6, %s3109_s25  ;;  %p3113_p1 = scmp.lt.u32.totalorder %s3109_s25, %s3532_s6 }
  0x7e   :  { %p3115_p2 = pnand %p3113_p1, %p3110_p0 }
  0x80   :  { %3118 = shalt.err (!%p3115_p2)
}
  0x81   :  { %s3119_s4 = scalar_lea.vmem %s78_s24, 4096  ;;  %p3124_p4 = scmp.lt.s32.totalorder %s78_s24, %s78_s24 }
  0x82   :  { %p3120_p3 = scmp.ne.s32.totalorder %s78_s24, %s3119_s4  ;;  %p3125_p5 = scmp.lt.s32.totalorder %s3119_s4, %s3119_s4 }
  0x84   :  { %p3126_p6 = por %p3125_p5, %p3124_p4 }
  0x86   :  { %p3127_p7 = pnand %p3126_p6, %p3120_p3 }
  0x88   :  { %3130 = shalt.err (!%p3127_p7)
}
  0x89   :  { %83 = dma.hbm_to_vmem [thread:$0]  %s3532_s6, 4096, %s78_s24, [#allocation8], %s3214_s16, %s3214_s16, %s3215_s21  }
  0x8a   :  { %s3131_s19 = scalar_lea.hbm %s3534_s8, 2048 }
  0x8b   :  { %p3132_p8 = scmp.ne.s32.totalorder %s3534_s8, %s3131_s19  ;;  %p3135_p9 = scmp.lt.u32.totalorder %s3131_s19, %s3534_s8 }
  0x8d   :  { %p3137_p10 = pnand %p3135_p9, %p3132_p8 }
  0x8f   :  { %3140 = shalt.err (!%p3137_p10)
}
  0x90   :  { %s3141_s22 = scalar_lea.vmem %s100_s11, 2048  ;;  %p3146_p12 = scmp.lt.s32.totalorder %s100_s11, %s100_s11 }
  0x91   :  { %p3142_p11 = scmp.ne.s32.totalorder %s100_s11, %s3141_s22  ;;  %p3147_p13 = scmp.lt.s32.totalorder %s3141_s22, %s3141_s22 }
  0x93   :  { %p3148_p0 = por %p3147_p13, %p3146_p12 }
  0x95   :  { %p3149_p1 = pnand %p3148_p0, %p3142_p11 }
  0x97   :  { %3152 = shalt.err (!%p3149_p1)
}
  0x98   :  { %105 = dma.hbm_to_vmem [thread:$0]  %s3534_s8, 2048, %s100_s11, [#allocation11], %s3214_s16, %s3214_s16, %s3215_s21  }
  0x99   :  { %s3224_s24 = smov [#allocation15]   ;;  %s3225_s14 = smov [#allocation18]  }
  0x9a   :  { %s124_s5 = sshll.u32 %s3224_s24, 4  ;;  %s146_s28 = sshll.u32 %s3225_s14, 4  ;;  %s125_s5 = int_to_ptr.vmem [resolvable:$true] %s124_s5  ;;  %s147_s28 = int_to_ptr.vmem [resolvable:$true] %s146_s28 }
  0x9b   :  { %s3153_s3 = scalar_lea.hbm %s3536_s10, 16 }
  0x9c   :  { %p3154_p2 = scmp.ne.s32.totalorder %s3536_s10, %s3153_s3  ;;  %p3157_p3 = scmp.lt.u32.totalorder %s3153_s3, %s3536_s10 }
  0x9e   :  { %p3159_p4 = pnand %p3157_p3, %p3154_p2 }
  0xa0   :  { %3162 = shalt.err (!%p3159_p4)
}
  0xa1   :  { %s3163_s8 = scalar_lea.vmem %s125_s5, 16  ;;  %s3167_s16 = scalar_lea.vmem %s125_s5, 32 }
  0xa2   :  { %p3164_p5 = scmp.ne.s32.totalorder %s125_s5, %s3163_s8  ;;  %p3168_p6 = scmp.lt.s32.totalorder %s125_s5, %s125_s5 }
  0xa3   :  { %p3169_p7 = scmp.lt.s32.totalorder %s3167_s16, %s3163_s8 }
  0xa5   :  { %p3170_p8 = por %p3169_p7, %p3168_p6 }
  0xa7   :  { %p3171_p9 = pnand %p3170_p8, %p3164_p5 }
  0xa9   :  { %3174 = shalt.err (!%p3171_p9)
}
  0xaa   :  { %127 = dma.hbm_to_vmem [thread:$0]  %s3536_s10, 16, %s125_s5, [#allocation14]  }
  0xab   :  { %s3175_s18 = scalar_lea.hbm %s3538_s12, 16 }
  0xac   :  { %p3176_p10 = scmp.ne.s32.totalorder %s3538_s12, %s3175_s18  ;;  %p3179_p11 = scmp.lt.u32.totalorder %s3175_s18, %s3538_s12 }
  0xae   :  { %p3181_p12 = pnand %p3179_p11, %p3176_p10 }
  0xb0   :  { %3184 = shalt.err (!%p3181_p12)
}
  0xb1   :  { %s3185_s7 = scalar_lea.vmem %s147_s28, 16  ;;  %s3189_s22 = scalar_lea.vmem %s147_s28, 32 }
  0xb2   :  { %p3186_p13 = scmp.ne.s32.totalorder %s147_s28, %s3185_s7  ;;  %p3190_p0 = scmp.lt.s32.totalorder %s147_s28, %s147_s28 }
  0xb3   :  { %p3191_p1 = scmp.lt.s32.totalorder %s3189_s22, %s3185_s7 }
  0xb5   :  { %p3192_p2 = por %p3191_p1, %p3190_p0 }
  0xb7   :  { %p3193_p3 = pnand %p3192_p2, %p3186_p13 }
  0xb9   :  { %3196 = shalt.err (!%p3193_p3)
}
  0xba   :  { %149 = dma.hbm_to_vmem [thread:$0]  %s3538_s12, 16, %s147_s28, [#allocation17]  }
  0xbb   :  { %3197 = dma.done.wait [#allocation3], 65536  }
  0xbc   :  { %3198 = vsyncadd [#allocation3], 4294901760 }
  0xbd   :  { %3199 = dma.done.wait [#allocation5], 16448  }
  0xbe   :  { %3200 = vsyncadd [#allocation5], 4294950848 }
  0xbf   :  { %3201 = dma.done.wait [#allocation8], 4128  }
  0xc0   :  { %3202 = vsyncadd [#allocation8], 4294963168 }
  0xc1   :  { %3203 = dma.done.wait [#allocation11], 2064  }
  0xc2   :  { %3204 = vsyncadd [#allocation11], 4294965232 }
  0xc3   :  { %3205 = dma.done.wait [#allocation14], 2064  }
  0xc4   :  { %3206 = vsyncadd [#allocation14], 4294965232 }
  0xc5   :  { %3207 = dma.done.wait [#allocation17], 2064  }
  0xc6   :  { %3208 = vsyncadd [#allocation17], 4294965232  ;;  %v192_v0 = vld [vmem:[#allocation2 + $0x8] sm:$0xff]  ;;  %v194_v2 = vld [vmem:[#allocation2 + $0x18] sm:$0xff]  ;;  %vm3227_vm0 = vmmov 0  }
  0xc7   :  { %v196_v1 = vld [vmem:[#allocation2 + $0x28] sm:$0xff]  ;;  %v198_v4 = vld [vmem:[#allocation2 + $0x38] sm:$0xff]  ;;  %v191_v5 = vld [vmem:[#allocation2] sm:$0xff] }
  0xc8   :  { %v2171_v3 = vpack.c.bf16 %v196_v1, %v192_v0  ;;  %v195_v6 = vld [vmem:[#allocation2 + $0x20] sm:$0xff]  ;;  %v2427_v7 = vpack.c.bf16 %v198_v4, %v194_v2  ;;  %v193_v9 = vld [vmem:[#allocation2 + $0x10] sm:$0xff]  ;;  %v200_v11 = vld [vmem:[#allocation2 + $0x48] sm:$0xff] }
  0xc9   :  { %v2173_v8 = vpack.c.bf16 %v195_v6, %v191_v5  ;;  %v197_v10 = vld [vmem:[#allocation2 + $0x30] sm:$0xff]  ;;  %v204_v13 = vld [vmem:[#allocation2 + $0x68] sm:$0xff]  ;;  %v202_v14 = vld [vmem:[#allocation2 + $0x58] sm:$0xff] }
  0xca   :  { %2172 = vmatprep.subr.bf16.mxu0 %v2171_v3  ;;  %v2429_v12 = vpack.c.bf16 %v197_v10, %v193_v9  ;;  %v206_v15 = vld [vmem:[#allocation2 + $0x78] sm:$0xff]  ;;  %2428 = vmatprep.subr.bf16.mxu1 %v2427_v7  ;;  %v2175_v16 = vpack.c.bf16 %v204_v13, %v200_v11  ;;  %v199_v18 = vld [vmem:[#allocation2 + $0x40] sm:$0xff]  ;;  %v201_v20 = vld [vmem:[#allocation2 + $0x50] sm:$0xff] }
  0xcb   :  { %2174 = vmatpush1.bf16.msra.mxu0 %v2173_v8  ;;  %v2431_v17 = vpack.c.bf16 %v206_v15, %v202_v14  ;;  %v203_v19 = vld [vmem:[#allocation2 + $0x60] sm:$0xff]  ;;  %v205_v22 = vld [vmem:[#allocation2 + $0x70] sm:$0xff]  ;;  %v208_v23 = vld [vmem:[#allocation2 + $0x88] sm:$0xff] }
  0xcc   :  { %2430 = vmatpush1.bf16.msra.mxu1 %v2429_v12  ;;  %v2177_v21 = vpack.c.bf16 %v203_v19, %v199_v18  ;;  %v212_v24 = vld [vmem:[#allocation2 + $0xa8] sm:$0xff]  ;;  %2176 = vmatprep.subr.bf16.mxu0 %v2175_v16  ;;  %v2433_v25 = vpack.c.bf16 %v205_v22, %v201_v20  ;;  %v210_v27 = vld [vmem:[#allocation2 + $0x98] sm:$0xff]  ;;  %v207_v29 = vld [vmem:[#allocation2 + $0x80] sm:$0xff] }
  0xcd   :  { %2432 = vmatprep.subr.bf16.mxu1 %v2431_v17  ;;  %v2179_v26 = vpack.c.bf16 %v212_v24, %v208_v23  ;;  %v214_v28 = vld [vmem:[#allocation2 + $0xb8] sm:$0xff]  ;;  %v211_v31 = vld [vmem:[#allocation2 + $0xa0] sm:$0xff]  ;;  %v209_v32 = vld [vmem:[#allocation2 + $0x90] sm:$0xff] }
  0xce   :  { %v2435_v30 = vpack.c.bf16 %v214_v28, %v210_v27  ;;  %v213_v33 = vld [vmem:[#allocation2 + $0xb0] sm:$0xff]  ;;  %v2181_v34 = vpack.c.bf16 %v211_v31, %v207_v29  ;;  %v216_v35 = vld [vmem:[#allocation2 + $0xc8] sm:$0xff]  ;;  %v218_v37 = vld [vmem:[#allocation2 + $0xd8] sm:$0xff] }
  0xcf   :  { %2178 = vmatpush1.bf16.msra.mxu0 %v2177_v21  ;;  %v220_v36 = vld [vmem:[#allocation2 + $0xe8] sm:$0xff]  ;;  %v2437_v38 = vpack.c.bf16 %v213_v33, %v209_v32  ;;  %v222_v40 = vld [vmem:[#allocation2 + $0xf8] sm:$0xff]  ;;  %v215_v41 = vld [vmem:[#allocation2 + $0xc0] sm:$0xff] }
  0xd0   :  { %2434 = vmatpush1.bf16.msra.mxu1 %v2433_v25  ;;  %2180 = vmatprep.subr.bf16.mxu0 %v2179_v26  ;;  %v2183_v39 = vpack.c.bf16 %v220_v36, %v216_v35  ;;  %v219_v42 = vld [vmem:[#allocation2 + $0xe0] sm:$0xff]  ;;  %v2439_v43 = vpack.c.bf16 %v222_v40, %v218_v37  ;;  %v217_v44 = vld [vmem:[#allocation2 + $0xd0] sm:$0xff]  ;;  %v224_v46 = vld [vmem:[#allocation2 + $0x108] sm:$0xff] }
  0xd1   :  { %2436 = vmatprep.subr.bf16.mxu1 %v2435_v30  ;;  %v221_v45 = vld [vmem:[#allocation2 + $0xf0] sm:$0xff]  ;;  %v228_v47 = vld [vmem:[#allocation2 + $0x128] sm:$0xff]  ;;  %v226_v48 = vld [vmem:[#allocation2 + $0x118] sm:$0xff]  ;;  %v2185_v50 = vpack.c.bf16 %v219_v42, %v215_v41 }
  0xd2   :  { %v230_v49 = vld [vmem:[#allocation2 + $0x138] sm:$0xff]  ;;  %v2441_v51 = vpack.c.bf16 %v221_v45, %v217_v44  ;;  %v2187_v52 = vpack.c.bf16 %v228_v47, %v224_v46  ;;  %v223_v53 = vld [vmem:[#allocation2 + $0x100] sm:$0xff]  ;;  %v225_v55 = vld [vmem:[#allocation2 + $0x110] sm:$0xff] }
  0xd3   :  { %2182 = vmatpush1.bf16.msra.mxu0 %v2181_v34  ;;  %v227_v54 = vld [vmem:[#allocation2 + $0x120] sm:$0xff]  ;;  %v2443_v56 = vpack.c.bf16 %v230_v49, %v226_v48  ;;  %v229_v57 = vld [vmem:[#allocation2 + $0x130] sm:$0xff]  ;;  %v232_v58 = vld [vmem:[#allocation2 + $0x148] sm:$0xff] }
  0xd4   :  { %2438 = vmatpush1.bf16.msra.mxu1 %v2437_v38  ;;  %2184 = vmatprep.subr.bf16.mxu0 %v2183_v39  ;;  %v236_v59 = vld [vmem:[#allocation2 + $0x168] sm:$0xff]  ;;  %v234_v60 = vld [vmem:[#allocation2 + $0x158] sm:$0xff]  ;;  %v2189_v62 = vpack.c.bf16 %v227_v54, %v223_v53  ;;  %v2445_v63 = vpack.c.bf16 %v229_v57, %v225_v55  ;;  %v231_v1 = vld [vmem:[#allocation2 + $0x140] sm:$0xff] }
  0xd5   :  { %2440 = vmatprep.subr.bf16.mxu1 %v2439_v43  ;;  %v238_v61 = vld [vmem:[#allocation2 + $0x178] sm:$0xff]  ;;  %v2191_v0 = vpack.c.bf16 %v236_v59, %v232_v58  ;;  %v235_v2 = vld [vmem:[#allocation2 + $0x160] sm:$0xff]  ;;  %v233_v3 = vld [vmem:[#allocation2 + $0x150] sm:$0xff] }
  0xd6   :  { %v2447_v4 = vpack.c.bf16 %v238_v61, %v234_v60  ;;  %v237_v5 = vld [vmem:[#allocation2 + $0x170] sm:$0xff]  ;;  %v240_v6 = vld [vmem:[#allocation2 + $0x188] sm:$0xff]  ;;  %v242_v8 = vld [vmem:[#allocation2 + $0x198] sm:$0xff]  ;;  %v2193_v10 = vpack.c.bf16 %v235_v2, %v231_v1 }
  0xd7   :  { %2186 = vmatpush1.bf16.msra.mxu0 %v2185_v50  ;;  %v244_v7 = vld [vmem:[#allocation2 + $0x1a8] sm:$0xff]  ;;  %v246_v9 = vld [vmem:[#allocation2 + $0x1b8] sm:$0xff]  ;;  %v2449_v11 = vpack.c.bf16 %v237_v5, %v233_v3  ;;  %v239_v13 = vld [vmem:[#allocation2 + $0x180] sm:$0xff] }
  0xd8   :  { %2442 = vmatpush1.bf16.msra.mxu1 %v2441_v51  ;;  %2188 = vmatprep.subr.bf16.mxu0 %v2187_v52  ;;  %v2195_v12 = vpack.c.bf16 %v244_v7, %v240_v6  ;;  %v243_v14 = vld [vmem:[#allocation2 + $0x1a0] sm:$0xff]  ;;  %v241_v15 = vld [vmem:[#allocation2 + $0x190] sm:$0xff]  ;;  %v2451_v16 = vpack.c.bf16 %v246_v9, %v242_v8  ;;  %v248_v18 = vld [vmem:[#allocation2 + $0x1c8] sm:$0xff] }
  0xd9   :  { %2444 = vmatprep.subr.bf16.mxu1 %v2443_v56  ;;  %v245_v17 = vld [vmem:[#allocation2 + $0x1b0] sm:$0xff]  ;;  %v252_v19 = vld [vmem:[#allocation2 + $0x1e8] sm:$0xff]  ;;  %v250_v20 = vld [vmem:[#allocation2 + $0x1d8] sm:$0xff]  ;;  %v2197_v22 = vpack.c.bf16 %v243_v14, %v239_v13 }
  0xda   :  { %v254_v21 = vld [vmem:[#allocation2 + $0x1f8] sm:$0xff]  ;;  %v2453_v23 = vpack.c.bf16 %v245_v17, %v241_v15  ;;  %v2199_v24 = vpack.c.bf16 %v252_v19, %v248_v18  ;;  %v247_v25 = vld [vmem:[#allocation2 + $0x1c0] sm:$0xff]  ;;  %v249_v27 = vld [vmem:[#allocation2 + $0x1d0] sm:$0xff] }
  0xdb   :  { %2190 = vmatpush1.bf16.msra.mxu0 %v2189_v62  ;;  %v251_v26 = vld [vmem:[#allocation2 + $0x1e0] sm:$0xff]  ;;  %v2455_v28 = vpack.c.bf16 %v254_v21, %v250_v20  ;;  %v253_v29 = vld [vmem:[#allocation2 + $0x1f0] sm:$0xff]  ;;  %v256_v30 = vld [vmem:[#allocation2 + $0x208] sm:$0xff] }
  0xdc   :  { %2446 = vmatpush1.bf16.msra.mxu1 %v2445_v63  ;;  %2192 = vmatprep.subr.bf16.mxu0 %v2191_v0  ;;  %v260_v31 = vld [vmem:[#allocation2 + $0x228] sm:$0xff]  ;;  %v258_v32 = vld [vmem:[#allocation2 + $0x218] sm:$0xff]  ;;  %v2201_v34 = vpack.c.bf16 %v251_v26, %v247_v25  ;;  %v2457_v35 = vpack.c.bf16 %v253_v29, %v249_v27  ;;  %v255_v37 = vld [vmem:[#allocation2 + $0x200] sm:$0xff] }
  0xdd   :  { %2448 = vmatprep.subr.bf16.mxu1 %v2447_v4  ;;  %v262_v33 = vld [vmem:[#allocation2 + $0x238] sm:$0xff]  ;;  %v2203_v36 = vpack.c.bf16 %v260_v31, %v256_v30  ;;  %v259_v38 = vld [vmem:[#allocation2 + $0x220] sm:$0xff]  ;;  %v257_v39 = vld [vmem:[#allocation2 + $0x210] sm:$0xff] }
  0xde   :  { %v2459_v40 = vpack.c.bf16 %v262_v33, %v258_v32  ;;  %v261_v41 = vld [vmem:[#allocation2 + $0x230] sm:$0xff]  ;;  %v264_v42 = vld [vmem:[#allocation2 + $0x248] sm:$0xff]  ;;  %v266_v44 = vld [vmem:[#allocation2 + $0x258] sm:$0xff]  ;;  %v2205_v46 = vpack.c.bf16 %v259_v38, %v255_v37 }
  0xdf   :  { %2194 = vmatpush1.bf16.msra.mxu0 %v2193_v10  ;;  %v268_v43 = vld [vmem:[#allocation2 + $0x268] sm:$0xff]  ;;  %v270_v45 = vld [vmem:[#allocation2 + $0x278] sm:$0xff]  ;;  %v2461_v47 = vpack.c.bf16 %v261_v41, %v257_v39  ;;  %v263_v49 = vld [vmem:[#allocation2 + $0x240] sm:$0xff] }
  0xe0   :  { %2450 = vmatpush1.bf16.msra.mxu1 %v2449_v11  ;;  %2196 = vmatprep.subr.bf16.mxu0 %v2195_v12  ;;  %v2207_v48 = vpack.c.bf16 %v268_v43, %v264_v42  ;;  %v267_v50 = vld [vmem:[#allocation2 + $0x260] sm:$0xff]  ;;  %v265_v51 = vld [vmem:[#allocation2 + $0x250] sm:$0xff]  ;;  %v2463_v52 = vpack.c.bf16 %v270_v45, %v266_v44  ;;  %v272_v54 = vld [vmem:[#allocation2 + $0x288] sm:$0xff] }
  0xe1   :  { %2452 = vmatprep.subr.bf16.mxu1 %v2451_v16  ;;  %v269_v53 = vld [vmem:[#allocation2 + $0x270] sm:$0xff]  ;;  %v276_v55 = vld [vmem:[#allocation2 + $0x2a8] sm:$0xff]  ;;  %v274_v56 = vld [vmem:[#allocation2 + $0x298] sm:$0xff]  ;;  %v2209_v58 = vpack.c.bf16 %v267_v50, %v263_v49 }
  0xe2   :  { %v278_v57 = vld [vmem:[#allocation2 + $0x2b8] sm:$0xff]  ;;  %v2465_v59 = vpack.c.bf16 %v269_v53, %v265_v51  ;;  %v2211_v60 = vpack.c.bf16 %v276_v55, %v272_v54  ;;  %v271_v61 = vld [vmem:[#allocation2 + $0x280] sm:$0xff]  ;;  %v273_v63 = vld [vmem:[#allocation2 + $0x290] sm:$0xff] }
  0xe3   :  { %2198 = vmatpush1.bf16.msra.mxu0 %v2197_v22  ;;  %v275_v62 = vld [vmem:[#allocation2 + $0x2a0] sm:$0xff]  ;;  %v2467_v0 = vpack.c.bf16 %v278_v57, %v274_v56  ;;  %v277_v1 = vld [vmem:[#allocation2 + $0x2b0] sm:$0xff]  ;;  %v280_v2 = vld [vmem:[#allocation2 + $0x2c8] sm:$0xff] }
  0xe4   :  { %2454 = vmatpush1.bf16.msra.mxu1 %v2453_v23  ;;  %2200 = vmatprep.subr.bf16.mxu0 %v2199_v24  ;;  %v284_v3 = vld [vmem:[#allocation2 + $0x2e8] sm:$0xff]  ;;  %v282_v4 = vld [vmem:[#allocation2 + $0x2d8] sm:$0xff]  ;;  %v2213_v6 = vpack.c.bf16 %v275_v62, %v271_v61  ;;  %v279_v7 = vld [vmem:[#allocation2 + $0x2c0] sm:$0xff]  ;;  %v2469_v8 = vpack.c.bf16 %v277_v1, %v273_v63 }
  0xe5   :  { %2456 = vmatprep.subr.bf16.mxu1 %v2455_v28  ;;  %v286_v5 = vld [vmem:[#allocation2 + $0x2f8] sm:$0xff]  ;;  %v2215_v9 = vpack.c.bf16 %v284_v3, %v280_v2  ;;  %v283_v10 = vld [vmem:[#allocation2 + $0x2e0] sm:$0xff]  ;;  %v281_v11 = vld [vmem:[#allocation2 + $0x2d0] sm:$0xff] }
  0xe6   :  { %v285_v12 = vld [vmem:[#allocation2 + $0x2f0] sm:$0xff]  ;;  %v2471_v13 = vpack.c.bf16 %v286_v5, %v282_v4  ;;  %v288_v14 = vld [vmem:[#allocation2 + $0x308] sm:$0xff]  ;;  %v290_v17 = vld [vmem:[#allocation2 + $0x318] sm:$0xff]  ;;  %v2217_v19 = vpack.c.bf16 %v283_v10, %v279_v7 }
  0xe7   :  { %2202 = vmatpush1.bf16.msra.mxu0 %v2201_v34  ;;  %v292_v15 = vld [vmem:[#allocation2 + $0x328] sm:$0xff]  ;;  %v294_v18 = vld [vmem:[#allocation2 + $0x338] sm:$0xff]  ;;  %v2473_v20 = vpack.c.bf16 %v285_v12, %v281_v11  ;;  %v287_v22 = vld [vmem:[#allocation2 + $0x300] sm:$0xff] }
  0xe8   :  { %2458 = vmatpush1.bf16.msra.mxu1 %v2457_v35  ;;  %2204 = vmatprep.subr.bf16.mxu0 %v2203_v36  ;;  %v184_v16 = vld [vmem:[%s3526_s0 + $0x8] sm:$0xff]  ;;  %v2219_v21 = vpack.c.bf16 %v292_v15, %v288_v14  ;;  %v291_v23 = vld [vmem:[#allocation2 + $0x320] sm:$0xff]  ;;  %v289_v24 = vld [vmem:[#allocation2 + $0x310] sm:$0xff]  ;;  %v2475_v25 = vpack.c.bf16 %v294_v18, %v290_v17 }
  0xe9   :  { %2460 = vmatprep.subr.bf16.mxu1 %v2459_v40  ;;  %789 = vmatprep.mubr.f32.mxu0 %v184_v16  ;;  %v293_v26 = vld [vmem:[#allocation2 + $0x330] sm:$0xff]  ;;  %v296_v27 = vld [vmem:[#allocation2 + $0x348] sm:$0xff]  ;;  %v298_v29 = vld [vmem:[#allocation2 + $0x358] sm:$0xff]  ;;  %v2221_v31 = vpack.c.bf16 %v291_v23, %v287_v22 }
  0xea   :  { %1073 = vmatprep.mubr.f32.mxu1 %v184_v16  ;;  %v300_v28 = vld [vmem:[#allocation2 + $0x368] sm:$0xff]  ;;  %v302_v30 = vld [vmem:[#allocation2 + $0x378] sm:$0xff]  ;;  %v2477_v32 = vpack.c.bf16 %v293_v26, %v289_v24  ;;  %v295_v34 = vld [vmem:[#allocation2 + $0x340] sm:$0xff] }
  0xeb   :  { %2206 = vmatpush1.bf16.msra.mxu0 %v2205_v46  ;;  %v2223_v33 = vpack.c.bf16 %v300_v28, %v296_v27  ;;  %v299_v35 = vld [vmem:[#allocation2 + $0x360] sm:$0xff]  ;;  %v297_v36 = vld [vmem:[#allocation2 + $0x350] sm:$0xff]  ;;  %v2479_v37 = vpack.c.bf16 %v302_v30, %v298_v29  ;;  %v304_v39 = vld [vmem:[#allocation2 + $0x388] sm:$0xff] }
  0xec   :  { %2462 = vmatpush1.bf16.msra.mxu1 %v2461_v47  ;;  %2208 = vmatprep.subr.bf16.mxu0 %v2207_v48  ;;  %v301_v38 = vld [vmem:[#allocation2 + $0x370] sm:$0xff]  ;;  %v308_v40 = vld [vmem:[#allocation2 + $0x3a8] sm:$0xff]  ;;  %v306_v41 = vld [vmem:[#allocation2 + $0x398] sm:$0xff]  ;;  %v2225_v43 = vpack.c.bf16 %v299_v35, %v295_v34 }
  0xed   :  { %2464 = vmatprep.subr.bf16.mxu1 %v2463_v52  ;;  %v310_v42 = vld [vmem:[#allocation2 + $0x3b8] sm:$0xff]  ;;  %v2481_v44 = vpack.c.bf16 %v301_v38, %v297_v36  ;;  %v2227_v45 = vpack.c.bf16 %v308_v40, %v304_v39  ;;  %v303_v46 = vld [vmem:[#allocation2 + $0x380] sm:$0xff]  ;;  %v305_v48 = vld [vmem:[#allocation2 + $0x390] sm:$0xff] }
  0xee   :  { %v307_v47 = vld [vmem:[#allocation2 + $0x3a0] sm:$0xff]  ;;  %v2483_v49 = vpack.c.bf16 %v310_v42, %v306_v41  ;;  %v309_v50 = vld [vmem:[#allocation2 + $0x3b0] sm:$0xff]  ;;  %v312_v51 = vld [vmem:[#allocation2 + $0x3c8] sm:$0xff] }
  0xef   :  { %2210 = vmatpush1.bf16.msra.mxu0 %v2209_v58  ;;  %v316_v52 = vld [vmem:[#allocation2 + $0x3e8] sm:$0xff]  ;;  %v314_v53 = vld [vmem:[#allocation2 + $0x3d8] sm:$0xff]  ;;  %v2229_v55 = vpack.c.bf16 %v307_v47, %v303_v46  ;;  %v2485_v56 = vpack.c.bf16 %v309_v50, %v305_v48  ;;  %v311_v58 = vld [vmem:[#allocation2 + $0x3c0] sm:$0xff] }
  0xf0   :  { %2466 = vmatpush1.bf16.msra.mxu1 %v2465_v59  ;;  %2212 = vmatprep.subr.bf16.mxu0 %v2211_v60  ;;  %v318_v54 = vld [vmem:[#allocation2 + $0x3f8] sm:$0xff]  ;;  %v2231_v57 = vpack.c.bf16 %v316_v52, %v312_v51  ;;  %v315_v59 = vld [vmem:[#allocation2 + $0x3e0] sm:$0xff]  ;;  %v313_v60 = vld [vmem:[#allocation2 + $0x3d0] sm:$0xff] }
  0xf1   :  { %2468 = vmatprep.subr.bf16.mxu1 %v2467_v0  ;;  %v2487_v61 = vpack.c.bf16 %v318_v54, %v314_v53  ;;  %v317_v62 = vld [vmem:[#allocation2 + $0x3f0] sm:$0xff]  ;;  %v320_v63 = vld [vmem:[#allocation2 + $0x408] sm:$0xff]  ;;  %v322_v1 = vld [vmem:[#allocation2 + $0x418] sm:$0xff]  ;;  %v2233_v3 = vpack.c.bf16 %v315_v59, %v311_v58 }
  0xf2   :  { %v324_v0 = vld [vmem:[#allocation2 + $0x428] sm:$0xff]  ;;  %v326_v2 = vld [vmem:[#allocation2 + $0x438] sm:$0xff]  ;;  %v2489_v4 = vpack.c.bf16 %v317_v62, %v313_v60  ;;  %v323_v7 = vld [vmem:[#allocation2 + $0x420] sm:$0xff] }
  0xf3   :  { %2214 = vmatpush1.bf16.msra.mxu0 %v2213_v6  ;;  %v2235_v5 = vpack.c.bf16 %v324_v0, %v320_v63  ;;  %v319_v6 = vld [vmem:[#allocation2 + $0x400] sm:$0xff]  ;;  %v325_v10 = vld [vmem:[#allocation2 + $0x430] sm:$0xff]  ;;  %v328_v11 = vld [vmem:[#allocation2 + $0x448] sm:$0xff] }
  0xf4   :  { %2470 = vmatpush1.bf16.msra.mxu1 %v2469_v8  ;;  %2216 = vmatprep.subr.bf16.mxu0 %v2215_v9  ;;  %v321_v8 = vld [vmem:[#allocation2 + $0x410] sm:$0xff]  ;;  %v2491_v9 = vpack.c.bf16 %v326_v2, %v322_v1  ;;  %v332_v12 = vld [vmem:[#allocation2 + $0x468] sm:$0xff]  ;;  %v334_v14 = vld [vmem:[#allocation2 + $0x478] sm:$0xff]  ;;  %v2237_v16 = vpack.c.bf16 %v323_v7, %v319_v6 }
  0xf5   :  { %2472 = vmatprep.subr.bf16.mxu1 %v2471_v13  ;;  %v330_v13 = vld [vmem:[#allocation2 + $0x458] sm:$0xff]  ;;  %v183_v15 = vld [vmem:[%s3526_s0] sm:$0xff]  ;;  %v2493_v17 = vpack.c.bf16 %v325_v10, %v321_v8  ;;  %v2239_v18 = vpack.c.bf16 %v332_v12, %v328_v11  ;;  %v333_v23 = vld [vmem:[#allocation2 + $0x470] sm:$0xff] }
  0xf6   :  { %v2495_v22 = vpack.c.bf16 %v334_v14, %v330_v13  ;;  %v336_v24 = vld [vmem:[#allocation2 + $0x488] sm:$0xff]  ;;  %v338_v26 = vld [vmem:[#allocation2 + $0x498] sm:$0xff]  ;;  %v341_v35 = vld [vmem:[#allocation2 + $0x4b0] sm:$0xff] }
  0xf7   :  { %2218 = vmatpush1.bf16.msra.mxu0 %v2217_v19  ;;  %v327_v19 = vld [vmem:[#allocation2 + $0x440] sm:$0xff]  ;;  %v342_v27 = vld [vmem:[#allocation2 + $0x4b8] sm:$0xff]  ;;  %v344_v36 = vld [vmem:[#allocation2 + $0x4c8] sm:$0xff] }
  0xf8   :  { %2474 = vmatpush1.bf16.msra.mxu1 %v2473_v20  ;;  %2220 = vmatprep.subr.bf16.mxu0 %v2219_v21  ;;  %v331_v20 = vld [vmem:[#allocation2 + $0x460] sm:$0xff]  ;;  %v329_v21 = vld [vmem:[#allocation2 + $0x450] sm:$0xff]  ;;  %v2499_v34 = vpack.c.bf16 %v342_v27, %v338_v26  ;;  %v346_v38 = vld [vmem:[#allocation2 + $0x4d8] sm:$0xff] }
  0xf9   :  { %2476 = vmatprep.subr.bf16.mxu1 %v2475_v25  ;;  %v340_v25 = vld [vmem:[#allocation2 + $0x4a8] sm:$0xff]  ;;  %v2241_v28 = vpack.c.bf16 %v331_v20, %v327_v19  ;;  %v2497_v29 = vpack.c.bf16 %v333_v23, %v329_v21  ;;  %v350_v39 = vld [vmem:[#allocation2 + $0x4f8] sm:$0xff]  ;;  %v349_v47 = vld [vmem:[#allocation2 + $0x4f0] sm:$0xff] }
  0xfa   :  { %v2243_v30 = vpack.c.bf16 %v340_v25, %v336_v24  ;;  %v2503_v46 = vpack.c.bf16 %v350_v39, %v346_v38  ;;  %v352_v48 = vld [vmem:[#allocation2 + $0x508] sm:$0xff]  ;;  %v354_v50 = vld [vmem:[#allocation2 + $0x518] sm:$0xff]  ;;  %v357_v59 = vld [vmem:[#allocation2 + $0x530] sm:$0xff] }
  0xfb   :  { %2222 = vmatpush1.bf16.msra.mxu0 %v2221_v31  ;;  %v335_v31 = vld [vmem:[#allocation2 + $0x480] sm:$0xff]  ;;  %v358_v51 = vld [vmem:[#allocation2 + $0x538] sm:$0xff]  ;;  %v360_v60 = vld [vmem:[#allocation2 + $0x548] sm:$0xff] }
  0xfc   :  { %2478 = vmatpush1.bf16.msra.mxu1 %v2477_v32  ;;  %2224 = vmatprep.subr.bf16.mxu0 %v2223_v33  ;;  %v339_v32 = vld [vmem:[#allocation2 + $0x4a0] sm:$0xff]  ;;  %v337_v33 = vld [vmem:[#allocation2 + $0x490] sm:$0xff]  ;;  %v2507_v58 = vpack.c.bf16 %v358_v51, %v354_v50  ;;  %v362_v62 = vld [vmem:[#allocation2 + $0x558] sm:$0xff] }
  0xfd   :  { %2480 = vmatprep.subr.bf16.mxu1 %v2479_v37  ;;  %v348_v37 = vld [vmem:[#allocation2 + $0x4e8] sm:$0xff]  ;;  %v2245_v40 = vpack.c.bf16 %v339_v32, %v335_v31  ;;  %v2501_v41 = vpack.c.bf16 %v341_v35, %v337_v33  ;;  %v366_v63 = vld [vmem:[#allocation2 + $0x578] sm:$0xff]  ;;  %v365_v7 = vld [vmem:[#allocation2 + $0x570] sm:$0xff] }
  0xfe   :  { %v2247_v42 = vpack.c.bf16 %v348_v37, %v344_v36  ;;  %v2511_v6 = vpack.c.bf16 %v366_v63, %v362_v62  ;;  %v368_v8 = vld [vmem:[#allocation2 + $0x588] sm:$0xff]  ;;  %v370_v10 = vld [vmem:[#allocation2 + $0x598] sm:$0xff]  ;;  %v367_v13 = vld [vmem:[#allocation2 + $0x580] sm:$0xff] }
  0xff   :  { %2226 = vmatpush1.bf16.msra.mxu0 %v2225_v43  ;;  %v343_v43 = vld [vmem:[#allocation2 + $0x4c0] sm:$0xff]  ;;  %v374_v11 = vld [vmem:[#allocation2 + $0x5b8] sm:$0xff]  ;;  %v376_v20 = vld [vmem:[#allocation2 + $0x5c8] sm:$0xff] }
 0x100   :  { %2482 = vmatpush1.bf16.msra.mxu1 %v2481_v44  ;;  %2228 = vmatprep.subr.bf16.mxu0 %v2227_v45  ;;  %v347_v44 = vld [vmem:[#allocation2 + $0x4e0] sm:$0xff]  ;;  %v345_v45 = vld [vmem:[#allocation2 + $0x4d0] sm:$0xff]  ;;  %v2515_v19 = vpack.c.bf16 %v374_v11, %v370_v10  ;;  %v380_v21 = vld [vmem:[#allocation2 + $0x5e8] sm:$0xff] }
 0x101   :  { %2484 = vmatprep.subr.bf16.mxu1 %v2483_v49  ;;  %v356_v49 = vld [vmem:[#allocation2 + $0x528] sm:$0xff]  ;;  %v2249_v52 = vpack.c.bf16 %v347_v44, %v343_v43  ;;  %v2505_v53 = vpack.c.bf16 %v349_v47, %v345_v45  ;;  %v378_v23 = vld [vmem:[#allocation2 + $0x5d8] sm:$0xff]  ;;  %v2263_v27 = vpack.c.bf16 %v380_v21, %v376_v20  ;;  %v381_v32 = vld [vmem:[#allocation2 + $0x5f0] sm:$0xff] }
 0x102   :  { %v2251_v54 = vpack.c.bf16 %v356_v49, %v352_v48  ;;  %v382_v24 = vld [vmem:[#allocation2 + $0x5f8] sm:$0xff]  ;;  %v384_v33 = vld [vmem:[#allocation2 + $0x608] sm:$0xff]  ;;  %v389_v44 = vld [vmem:[#allocation2 + $0x630] sm:$0xff] }
 0x103   :  { %2230 = vmatpush1.bf16.msra.mxu0 %v2229_v55  ;;  %v351_v55 = vld [vmem:[#allocation2 + $0x500] sm:$0xff]  ;;  %v2519_v31 = vpack.c.bf16 %v382_v24, %v378_v23  ;;  %v386_v35 = vld [vmem:[#allocation2 + $0x618] sm:$0xff]  ;;  %v392_v45 = vld [vmem:[#allocation2 + $0x648] sm:$0xff] }
 0x104   :  { %2486 = vmatpush1.bf16.msra.mxu1 %v2485_v56  ;;  %2232 = vmatprep.subr.bf16.mxu0 %v2231_v57  ;;  %v355_v56 = vld [vmem:[#allocation2 + $0x520] sm:$0xff]  ;;  %v353_v57 = vld [vmem:[#allocation2 + $0x510] sm:$0xff]  ;;  %v390_v36 = vld [vmem:[#allocation2 + $0x638] sm:$0xff] }
 0x105   :  { %2488 = vmatprep.subr.bf16.mxu1 %v2487_v61  ;;  %v364_v61 = vld [vmem:[#allocation2 + $0x568] sm:$0xff]  ;;  %v2253_v0 = vpack.c.bf16 %v355_v56, %v351_v55  ;;  %v2509_v1 = vpack.c.bf16 %v357_v59, %v353_v57  ;;  %v2523_v43 = vpack.c.bf16 %v390_v36, %v386_v35  ;;  %v394_v47 = vld [vmem:[#allocation2 + $0x658] sm:$0xff]  ;;  %v397_v56 = vld [vmem:[#allocation2 + $0x670] sm:$0xff] }
 0x106   :  { %v2255_v2 = vpack.c.bf16 %v364_v61, %v360_v60  ;;  %v398_v48 = vld [vmem:[#allocation2 + $0x678] sm:$0xff]  ;;  %v400_v57 = vld [vmem:[#allocation2 + $0x688] sm:$0xff]  ;;  %v415_v24 = vld [vmem:[#allocation2 + $0x700] sm:$0xff] }
 0x107   :  { %2234 = vmatpush1.bf16.msra.mxu0 %v2233_v3  ;;  %v359_v3 = vld [vmem:[#allocation2 + $0x540] sm:$0xff]  ;;  %v2527_v55 = vpack.c.bf16 %v398_v48, %v394_v47  ;;  %v402_v59 = vld [vmem:[#allocation2 + $0x698] sm:$0xff] }
 0x108   :  { %2490 = vmatpush1.bf16.msra.mxu1 %v2489_v4  ;;  %2236 = vmatprep.subr.bf16.mxu0 %v2235_v5  ;;  %v363_v4 = vld [vmem:[#allocation2 + $0x560] sm:$0xff]  ;;  %v361_v5 = vld [vmem:[#allocation2 + $0x550] sm:$0xff]  ;;  %v406_v60 = vld [vmem:[#allocation2 + $0x6b8] sm:$0xff] }
 0x109   :  { %2492 = vmatprep.subr.bf16.mxu1 %v2491_v9  ;;  %v372_v9 = vld [vmem:[#allocation2 + $0x5a8] sm:$0xff]  ;;  %v2257_v12 = vpack.c.bf16 %v363_v4, %v359_v3  ;;  %v2513_v14 = vpack.c.bf16 %v365_v7, %v361_v5  ;;  %v2531_v3 = vpack.c.bf16 %v406_v60, %v402_v59  ;;  %v405_v4 = vld [vmem:[#allocation2 + $0x6b0] sm:$0xff]  ;;  %v410_v7 = vld [vmem:[#allocation2 + $0x6d8] sm:$0xff] }
 0x10a   :  { %790 = vmatmul.mubr.f32.vlgmr.msra.gmra.mrb[0].mxu0 %v183_v15  ;;  %v408_v5 = vld [vmem:[#allocation2 + $0x6c8] sm:$0xff]  ;;  %v422_v20 = vld [vmem:[#allocation2 + $0x738] sm:$0xff]  ;;  %v423_v36 = vld [vmem:[#allocation2 + $0x740] sm:$0xff] }
 0x10b   :  { %2238 = vmatpush1.bf16.msra.mxu0 %v2237_v16  ;;  %1074 = vmatmul.mubr.f32.vlgmr.msra.gmra.mrb[0].mxu1 %v183_v15  ;;  %v2259_v15 = vpack.c.bf16 %v372_v9, %v368_v8  ;;  %v371_v16 = vld [vmem:[#allocation2 + $0x5a0] sm:$0xff]  ;;  %v414_v8 = vld [vmem:[#allocation2 + $0x6f8] sm:$0xff] }
 0x10c   :  { %2494 = vmatpush1.bf16.msra.mxu1 %v2493_v17  ;;  %2240 = vmatprep.subr.bf16.mxu0 %v2239_v18  ;;  %v369_v17 = vld [vmem:[#allocation2 + $0x590] sm:$0xff]  ;;  %v2261_v25 = vpack.c.bf16 %v371_v16, %v367_v13  ;;  %v411_v13 = vld [vmem:[#allocation2 + $0x6e0] sm:$0xff] }
 0x10d   :  { %2496 = vmatprep.subr.bf16.mxu1 %v2495_v22  ;;  %v373_v18 = vld [vmem:[#allocation2 + $0x5b0] sm:$0xff]  ;;  %v186_v22 = vld [vmem:[%s3526_s0 + $0x18] sm:$0xff]  ;;  %v431_v48 = vld [vmem:[#allocation2 + $0x780] sm:$0xff] }
 0x10e   :  { %860 = vmatprep.mubr.f32.mxu0 %v186_v22  ;;  %1144 = vmatprep.mubr.f32.mxu1 %v186_v22  ;;  %v2517_v26 = vpack.c.bf16 %v373_v18, %v369_v17  ;;  %v413_v16 = vld [vmem:[#allocation2 + $0x6f0] sm:$0xff]  ;;  %v416_v17 = vld [vmem:[#allocation2 + $0x708] sm:$0xff]  ;;  %v439_v60 = vld [vmem:[#allocation2 + $0x7c0] sm:$0xff] }
 0x10f   :  { %2242 = vmatpush1.bf16.msra.mxu0 %v2241_v28  ;;  %v375_v28 = vld [vmem:[#allocation2 + $0x5c0] sm:$0xff]  ;;  %v420_v18 = vld [vmem:[#allocation2 + $0x728] sm:$0xff] }
 0x110   :  { %2498 = vmatpush1.bf16.msra.mxu1 %v2497_v29  ;;  %2244 = vmatprep.subr.bf16.mxu0 %v2243_v30  ;;  %v379_v29 = vld [vmem:[#allocation2 + $0x5e0] sm:$0xff]  ;;  %v377_v30 = vld [vmem:[#allocation2 + $0x5d0] sm:$0xff]  ;;  %v2283_v23 = vpack.c.bf16 %v420_v18, %v416_v17 }
 0x111   :  { %2500 = vmatprep.subr.bf16.mxu1 %v2499_v34  ;;  %v388_v34 = vld [vmem:[#allocation2 + $0x628] sm:$0xff]  ;;  %v2265_v37 = vpack.c.bf16 %v379_v29, %v375_v28  ;;  %v2521_v38 = vpack.c.bf16 %v381_v32, %v377_v30  ;;  %v421_v28 = vld [vmem:[#allocation2 + $0x730] sm:$0xff]  ;;  %v430_v32 = vld [vmem:[#allocation2 + $0x778] sm:$0xff] }
 0x112   :  { %v2267_v39 = vpack.c.bf16 %v388_v34, %v384_v33  ;;  %v424_v29 = vld [vmem:[#allocation2 + $0x748] sm:$0xff]  ;;  %v185_v17 = vld [vmem:[%s3526_s0 + $0x10] sm:$0xff] }
 0x113   :  { %2246 = vmatpush1.bf16.msra.mxu0 %v2245_v40  ;;  %v383_v40 = vld [vmem:[#allocation2 + $0x600] sm:$0xff]  ;;  %v428_v30 = vld [vmem:[#allocation2 + $0x768] sm:$0xff] }
 0x114   :  { %2502 = vmatpush1.bf16.msra.mxu1 %v2501_v41  ;;  %2248 = vmatprep.subr.bf16.mxu0 %v2247_v42  ;;  %v387_v41 = vld [vmem:[#allocation2 + $0x620] sm:$0xff]  ;;  %v385_v42 = vld [vmem:[#allocation2 + $0x610] sm:$0xff]  ;;  %v2287_v35 = vpack.c.bf16 %v428_v30, %v424_v29  ;;  %v470_v29 = vld [vmem:[#allocation2 + $0x8b8] sm:$0xff] }
 0x115   :  { %2504 = vmatprep.subr.bf16.mxu1 %v2503_v46  ;;  %v396_v46 = vld [vmem:[#allocation2 + $0x668] sm:$0xff]  ;;  %v2269_v49 = vpack.c.bf16 %v387_v41, %v383_v40  ;;  %v2525_v50 = vpack.c.bf16 %v389_v44, %v385_v42  ;;  %v429_v40 = vld [vmem:[#allocation2 + $0x770] sm:$0xff]  ;;  %v438_v44 = vld [vmem:[#allocation2 + $0x7b8] sm:$0xff] }
 0x116   :  { %v2271_v51 = vpack.c.bf16 %v396_v46, %v392_v45  ;;  %v432_v41 = vld [vmem:[#allocation2 + $0x788] sm:$0xff] }
 0x117   :  { %2250 = vmatpush1.bf16.msra.mxu0 %v2249_v52  ;;  %v391_v52 = vld [vmem:[#allocation2 + $0x640] sm:$0xff]  ;;  %v436_v42 = vld [vmem:[#allocation2 + $0x7a8] sm:$0xff] }
 0x118   :  { %2506 = vmatpush1.bf16.msra.mxu1 %v2505_v53  ;;  %2252 = vmatprep.subr.bf16.mxu0 %v2251_v54  ;;  %v395_v53 = vld [vmem:[#allocation2 + $0x660] sm:$0xff]  ;;  %v393_v54 = vld [vmem:[#allocation2 + $0x650] sm:$0xff]  ;;  %v2291_v47 = vpack.c.bf16 %v436_v42, %v432_v41  ;;  %v188_v30 = vld [vmem:[%s3526_s0 + $0x28] sm:$0xff] }
 0x119   :  { %2508 = vmatprep.subr.bf16.mxu1 %v2507_v58  ;;  %v404_v58 = vld [vmem:[#allocation2 + $0x6a8] sm:$0xff]  ;;  %v2273_v61 = vpack.c.bf16 %v395_v53, %v391_v52  ;;  %v2529_v62 = vpack.c.bf16 %v397_v56, %v393_v54  ;;  %v437_v52 = vld [vmem:[#allocation2 + $0x7b0] sm:$0xff]  ;;  %v446_v56 = vld [vmem:[#allocation2 + $0x7f8] sm:$0xff] }
 0x11a   :  { %v2275_v63 = vpack.c.bf16 %v404_v58, %v400_v57  ;;  %v440_v53 = vld [vmem:[#allocation2 + $0x7c8] sm:$0xff]  ;;  %v474_v41 = vld [vmem:[#allocation2 + $0x8d8] sm:$0xff] }
 0x11b   :  { %2254 = vmatpush1.bf16.msra.mxu0 %v2253_v0  ;;  %v399_v0 = vld [vmem:[#allocation2 + $0x680] sm:$0xff]  ;;  %v444_v54 = vld [vmem:[#allocation2 + $0x7e8] sm:$0xff]  ;;  %v478_v42 = vld [vmem:[#allocation2 + $0x8f8] sm:$0xff] }
 0x11c   :  { %2510 = vmatpush1.bf16.msra.mxu1 %v2509_v1  ;;  %2256 = vmatprep.subr.bf16.mxu0 %v2255_v2  ;;  %v403_v1 = vld [vmem:[#allocation2 + $0x6a0] sm:$0xff]  ;;  %v401_v2 = vld [vmem:[#allocation2 + $0x690] sm:$0xff]  ;;  %v2295_v59 = vpack.c.bf16 %v444_v54, %v440_v53  ;;  %v482_v53 = vld [vmem:[#allocation2 + $0x918] sm:$0xff] }
 0x11d   :  { %2512 = vmatprep.subr.bf16.mxu1 %v2511_v6  ;;  %v412_v6 = vld [vmem:[#allocation2 + $0x6e8] sm:$0xff]  ;;  %v2277_v9 = vpack.c.bf16 %v403_v1, %v399_v0  ;;  %v2533_v10 = vpack.c.bf16 %v405_v4, %v401_v2  ;;  %v445_v0 = vld [vmem:[#allocation2 + $0x7f0] sm:$0xff]  ;;  %v454_v4 = vld [vmem:[#allocation2 + $0x838] sm:$0xff] }
 0x11e   :  { %v2279_v11 = vpack.c.bf16 %v412_v6, %v408_v5  ;;  %v448_v1 = vld [vmem:[#allocation2 + $0x808] sm:$0xff]  ;;  %v486_v54 = vld [vmem:[#allocation2 + $0x938] sm:$0xff] }
 0x11f   :  { %2258 = vmatpush1.bf16.msra.mxu0 %v2257_v12  ;;  %v407_v12 = vld [vmem:[#allocation2 + $0x6c0] sm:$0xff]  ;;  %v452_v2 = vld [vmem:[#allocation2 + $0x828] sm:$0xff] }
 0x120   :  { %2514 = vmatpush1.bf16.msra.mxu1 %v2513_v14  ;;  %2260 = vmatprep.subr.bf16.mxu0 %v2259_v15  ;;  %v409_v14 = vld [vmem:[#allocation2 + $0x6d0] sm:$0xff]  ;;  %v2535_v15 = vpack.c.bf16 %v414_v8, %v410_v7  ;;  %v2281_v21 = vpack.c.bf16 %v411_v13, %v407_v12  ;;  %v2299_v7 = vpack.c.bf16 %v452_v2, %v448_v1  ;;  %v447_v8 = vld [vmem:[#allocation2 + $0x800] sm:$0xff]  ;;  %v456_v13 = vld [vmem:[#allocation2 + $0x848] sm:$0xff] }
 0x121   :  { %2516 = vmatprep.subr.bf16.mxu1 %v2515_v19  ;;  %v418_v19 = vld [vmem:[#allocation2 + $0x718] sm:$0xff]  ;;  %v2537_v22 = vpack.c.bf16 %v413_v16, %v409_v14  ;;  %v453_v12 = vld [vmem:[#allocation2 + $0x830] sm:$0xff]  ;;  %v460_v14 = vld [vmem:[#allocation2 + $0x868] sm:$0xff] }
 0x122   :  { %v462_v16 = vld [vmem:[#allocation2 + $0x878] sm:$0xff] }
 0x123   :  { %2262 = vmatpush1.bf16.msra.mxu0 %v2261_v25  ;;  %v419_v25 = vld [vmem:[#allocation2 + $0x720] sm:$0xff]  ;;  %v490_v1 = vld [vmem:[#allocation2 + $0x958] sm:$0xff] }
 0x124   :  { %2518 = vmatpush1.bf16.msra.mxu1 %v2517_v26  ;;  %2264 = vmatprep.subr.bf16.mxu0 %v2263_v27  ;;  %v417_v26 = vld [vmem:[#allocation2 + $0x710] sm:$0xff]  ;;  %v2539_v27 = vpack.c.bf16 %v422_v20, %v418_v19  ;;  %v2285_v33 = vpack.c.bf16 %v419_v25, %v415_v24  ;;  %v2303_v20 = vpack.c.bf16 %v460_v14, %v456_v13  ;;  %v494_v2 = vld [vmem:[#allocation2 + $0x978] sm:$0xff] }
 0x125   :  { %2520 = vmatprep.subr.bf16.mxu1 %v2519_v31  ;;  %v426_v31 = vld [vmem:[#allocation2 + $0x758] sm:$0xff]  ;;  %v2541_v34 = vpack.c.bf16 %v421_v28, %v417_v26  ;;  %v461_v25 = vld [vmem:[#allocation2 + $0x870] sm:$0xff]  ;;  %v464_v26 = vld [vmem:[#allocation2 + $0x888] sm:$0xff] }
 0x126   :  { %v466_v28 = vld [vmem:[#allocation2 + $0x898] sm:$0xff] }
 0x127   :  { %2266 = vmatpush1.bf16.msra.mxu0 %v2265_v37  ;;  %v427_v37 = vld [vmem:[#allocation2 + $0x760] sm:$0xff]  ;;  %v498_v13 = vld [vmem:[#allocation2 + $0x998] sm:$0xff] }
 0x128   :  { %2522 = vmatpush1.bf16.msra.mxu1 %v2521_v38  ;;  %2268 = vmatprep.subr.bf16.mxu0 %v2267_v39  ;;  %v425_v38 = vld [vmem:[#allocation2 + $0x750] sm:$0xff]  ;;  %v2543_v39 = vpack.c.bf16 %v430_v32, %v426_v31  ;;  %v2289_v45 = vpack.c.bf16 %v427_v37, %v423_v36  ;;  %v2563_v37 = vpack.c.bf16 %v470_v29, %v466_v28  ;;  %v502_v14 = vld [vmem:[#allocation2 + $0x9b8] sm:$0xff] }
 0x129   :  { %2524 = vmatprep.subr.bf16.mxu1 %v2523_v43  ;;  %v434_v43 = vld [vmem:[#allocation2 + $0x798] sm:$0xff]  ;;  %v2545_v46 = vpack.c.bf16 %v429_v40, %v425_v38  ;;  %v465_v36 = vld [vmem:[#allocation2 + $0x890] sm:$0xff]  ;;  %v476_v40 = vld [vmem:[#allocation2 + $0x8e8] sm:$0xff] }
 0x12a   :  { %v469_v38 = vld [vmem:[#allocation2 + $0x8b0] sm:$0xff] }
 0x12b   :  { %2270 = vmatpush1.bf16.msra.mxu0 %v2269_v49  ;;  %v435_v49 = vld [vmem:[#allocation2 + $0x7a0] sm:$0xff] }
 0x12c   :  { %2526 = vmatpush1.bf16.msra.mxu1 %v2525_v50  ;;  %2272 = vmatprep.subr.bf16.mxu0 %v2271_v51  ;;  %v433_v50 = vld [vmem:[#allocation2 + $0x790] sm:$0xff]  ;;  %v2547_v51 = vpack.c.bf16 %v438_v44, %v434_v43  ;;  %v2293_v57 = vpack.c.bf16 %v435_v49, %v431_v48  ;;  %v2565_v44 = vpack.c.bf16 %v469_v38, %v465_v36  ;;  %v516_v36 = vld [vmem:[#allocation2 + $0xa28] sm:$0xff]  ;;  %v518_v38 = vld [vmem:[#allocation2 + $0xa38] sm:$0xff] }
 0x12d   :  { %2528 = vmatprep.subr.bf16.mxu1 %v2527_v55  ;;  %v442_v55 = vld [vmem:[#allocation2 + $0x7d8] sm:$0xff]  ;;  %v2549_v58 = vpack.c.bf16 %v437_v52, %v433_v50  ;;  %v473_v48 = vld [vmem:[#allocation2 + $0x8d0] sm:$0xff]  ;;  %v2567_v49 = vpack.c.bf16 %v478_v42, %v474_v41  ;;  %v484_v52 = vld [vmem:[#allocation2 + $0x928] sm:$0xff] }
 0x12e   :  { %v477_v50 = vld [vmem:[#allocation2 + $0x8f0] sm:$0xff]  ;;  %v511_v42 = vld [vmem:[#allocation2 + $0xa00] sm:$0xff] }
 0x12f   :  { %2274 = vmatpush1.bf16.msra.mxu0 %v2273_v61  ;;  %v443_v61 = vld [vmem:[#allocation2 + $0x7e0] sm:$0xff] }
 0x130   :  { %2530 = vmatpush1.bf16.msra.mxu1 %v2529_v62  ;;  %2276 = vmatprep.subr.bf16.mxu0 %v2275_v63  ;;  %v441_v62 = vld [vmem:[#allocation2 + $0x7d0] sm:$0xff]  ;;  %v2551_v63 = vpack.c.bf16 %v446_v56, %v442_v55  ;;  %v2297_v5 = vpack.c.bf16 %v443_v61, %v439_v60  ;;  %v2569_v56 = vpack.c.bf16 %v477_v50, %v473_v48  ;;  %v524_v48 = vld [vmem:[#allocation2 + $0xa68] sm:$0xff]  ;;  %v526_v50 = vld [vmem:[#allocation2 + $0xa78] sm:$0xff] }
 0x131   :  { %2532 = vmatprep.subr.bf16.mxu1 %v2531_v3  ;;  %v450_v3 = vld [vmem:[#allocation2 + $0x818] sm:$0xff]  ;;  %v2553_v6 = vpack.c.bf16 %v445_v0, %v441_v62  ;;  %v481_v60 = vld [vmem:[#allocation2 + $0x910] sm:$0xff]  ;;  %v2571_v61 = vpack.c.bf16 %v486_v54, %v482_v53  ;;  %v492_v0 = vld [vmem:[#allocation2 + $0x968] sm:$0xff] }
 0x132   :  { %v485_v62 = vld [vmem:[#allocation2 + $0x930] sm:$0xff]  ;;  %v519_v54 = vld [vmem:[#allocation2 + $0xa40] sm:$0xff] }
 0x133   :  { %2278 = vmatpush1.bf16.msra.mxu0 %v2277_v9  ;;  %v451_v9 = vld [vmem:[#allocation2 + $0x820] sm:$0xff] }
 0x134   :  { %2534 = vmatpush1.bf16.msra.mxu1 %v2533_v10  ;;  %2280 = vmatprep.subr.bf16.mxu0 %v2279_v11  ;;  %v449_v10 = vld [vmem:[#allocation2 + $0x810] sm:$0xff]  ;;  %v2555_v11 = vpack.c.bf16 %v454_v4, %v450_v3  ;;  %v2301_v18 = vpack.c.bf16 %v451_v9, %v447_v8  ;;  %v2573_v4 = vpack.c.bf16 %v485_v62, %v481_v60  ;;  %v532_v60 = vld [vmem:[#allocation2 + $0xaa8] sm:$0xff]  ;;  %v534_v62 = vld [vmem:[#allocation2 + $0xab8] sm:$0xff] }
 0x135   :  { %2536 = vmatprep.subr.bf16.mxu1 %v2535_v15  ;;  %v458_v15 = vld [vmem:[#allocation2 + $0x858] sm:$0xff]  ;;  %v2557_v19 = vpack.c.bf16 %v453_v12, %v449_v10  ;;  %v489_v8 = vld [vmem:[#allocation2 + $0x950] sm:$0xff]  ;;  %v2575_v9 = vpack.c.bf16 %v494_v2, %v490_v1  ;;  %v500_v12 = vld [vmem:[#allocation2 + $0x9a8] sm:$0xff] }
 0x136   :  { %v2559_v24 = vpack.c.bf16 %v462_v16, %v458_v15  ;;  %v493_v10 = vld [vmem:[#allocation2 + $0x970] sm:$0xff]  ;;  %v527_v2 = vld [vmem:[#allocation2 + $0xa80] sm:$0xff] }
 0x137   :  { %2282 = vmatpush1.bf16.msra.mxu0 %v2281_v21  ;;  %v455_v21 = vld [vmem:[#allocation2 + $0x840] sm:$0xff]  ;;  %v2577_v16 = vpack.c.bf16 %v493_v10, %v489_v8  ;;  %v540_v8 = vld [vmem:[#allocation2 + $0xae8] sm:$0xff]  ;;  %v542_v10 = vld [vmem:[#allocation2 + $0xaf8] sm:$0xff] }
 0x138   :  { %2538 = vmatpush1.bf16.msra.mxu1 %v2537_v22  ;;  %2284 = vmatprep.subr.bf16.mxu0 %v2283_v23  ;;  %v459_v22 = vld [vmem:[#allocation2 + $0x860] sm:$0xff]  ;;  %v457_v23 = vld [vmem:[#allocation2 + $0x850] sm:$0xff] }
 0x139   :  { %2540 = vmatprep.subr.bf16.mxu1 %v2539_v27  ;;  %v468_v27 = vld [vmem:[#allocation2 + $0x8a8] sm:$0xff]  ;;  %v2305_v31 = vpack.c.bf16 %v459_v22, %v455_v21  ;;  %v2561_v32 = vpack.c.bf16 %v461_v25, %v457_v23  ;;  %v2579_v21 = vpack.c.bf16 %v502_v14, %v498_v13  ;;  %v501_v22 = vld [vmem:[#allocation2 + $0x9b0] sm:$0xff]  ;;  %v506_v25 = vld [vmem:[#allocation2 + $0x9d8] sm:$0xff] }
 0x13a   :  { %v504_v23 = vld [vmem:[#allocation2 + $0x9c8] sm:$0xff]  ;;  %v535_v14 = vld [vmem:[#allocation2 + $0xac0] sm:$0xff] }
 0x13b   :  { %2286 = vmatpush1.bf16.msra.mxu0 %v2285_v33  ;;  %v2307_v33 = vpack.c.bf16 %v468_v27, %v464_v26  ;;  %v510_v26 = vld [vmem:[#allocation2 + $0x9f8] sm:$0xff] }
 0x13c   :  { %2542 = vmatpush1.bf16.msra.mxu1 %v2541_v34  ;;  %2288 = vmatprep.subr.bf16.mxu0 %v2287_v35  ;;  %v463_v34 = vld [vmem:[#allocation2 + $0x880] sm:$0xff] }
 0x13d   :  { %2544 = vmatprep.subr.bf16.mxu1 %v2543_v39  ;;  %v467_v35 = vld [vmem:[#allocation2 + $0x8a0] sm:$0xff]  ;;  %v472_v39 = vld [vmem:[#allocation2 + $0x8c8] sm:$0xff] }
 0x13e   :  { %v2309_v43 = vpack.c.bf16 %v467_v35, %v463_v34  ;;  %v509_v34 = vld [vmem:[#allocation2 + $0x9f0] sm:$0xff]  ;;  %v512_v35 = vld [vmem:[#allocation2 + $0xa08] sm:$0xff] }
 0x13f   :  { %2290 = vmatpush1.bf16.msra.mxu0 %v2289_v45  ;;  %v2311_v45 = vpack.c.bf16 %v476_v40, %v472_v39  ;;  %v2331_v41 = vpack.c.bf16 %v516_v36, %v512_v35 }
 0x140   :  { %2546 = vmatpush1.bf16.msra.mxu1 %v2545_v46  ;;  %2292 = vmatprep.subr.bf16.mxu0 %v2291_v47  ;;  %v471_v46 = vld [vmem:[#allocation2 + $0x8c0] sm:$0xff] }
 0x141   :  { %2548 = vmatprep.subr.bf16.mxu1 %v2547_v51  ;;  %v475_v47 = vld [vmem:[#allocation2 + $0x8e0] sm:$0xff]  ;;  %v480_v51 = vld [vmem:[#allocation2 + $0x908] sm:$0xff] }
 0x142   :  { %v2313_v55 = vpack.c.bf16 %v475_v47, %v471_v46  ;;  %v517_v46 = vld [vmem:[#allocation2 + $0xa30] sm:$0xff]  ;;  %v520_v47 = vld [vmem:[#allocation2 + $0xa48] sm:$0xff] }
 0x143   :  { %2294 = vmatpush1.bf16.msra.mxu0 %v2293_v57  ;;  %v2315_v57 = vpack.c.bf16 %v484_v52, %v480_v51  ;;  %v2335_v53 = vpack.c.bf16 %v524_v48, %v520_v47 }
 0x144   :  { %2550 = vmatpush1.bf16.msra.mxu1 %v2549_v58  ;;  %2296 = vmatprep.subr.bf16.mxu0 %v2295_v59  ;;  %v479_v58 = vld [vmem:[#allocation2 + $0x900] sm:$0xff] }
 0x145   :  { %2552 = vmatprep.subr.bf16.mxu1 %v2551_v63  ;;  %v483_v59 = vld [vmem:[#allocation2 + $0x920] sm:$0xff]  ;;  %v488_v63 = vld [vmem:[#allocation2 + $0x948] sm:$0xff] }
 0x146   :  { %v2317_v3 = vpack.c.bf16 %v483_v59, %v479_v58  ;;  %v525_v58 = vld [vmem:[#allocation2 + $0xa70] sm:$0xff]  ;;  %v528_v59 = vld [vmem:[#allocation2 + $0xa88] sm:$0xff] }
 0x147   :  { %2298 = vmatpush1.bf16.msra.mxu0 %v2297_v5  ;;  %v2319_v5 = vpack.c.bf16 %v492_v0, %v488_v63  ;;  %v2339_v1 = vpack.c.bf16 %v532_v60, %v528_v59 }
 0x148   :  { %2554 = vmatpush1.bf16.msra.mxu1 %v2553_v6  ;;  %2300 = vmatprep.subr.bf16.mxu0 %v2299_v7  ;;  %v487_v6 = vld [vmem:[#allocation2 + $0x940] sm:$0xff] }
 0x149   :  { %2556 = vmatprep.subr.bf16.mxu1 %v2555_v11  ;;  %v491_v7 = vld [vmem:[#allocation2 + $0x960] sm:$0xff]  ;;  %v496_v11 = vld [vmem:[#allocation2 + $0x988] sm:$0xff] }
 0x14a   :  { %861 = vmatmul.mubr.f32.vlgmr.msra.gmra.mrb[0].mxu0 %v185_v17  ;;  %v2321_v15 = vpack.c.bf16 %v491_v7, %v487_v6  ;;  %v533_v6 = vld [vmem:[#allocation2 + $0xab0] sm:$0xff]  ;;  %v536_v7 = vld [vmem:[#allocation2 + $0xac8] sm:$0xff] }
 0x14b   :  { %2302 = vmatpush1.bf16.msra.mxu0 %v2301_v18  ;;  %1145 = vmatmul.mubr.f32.vlgmr.msra.gmra.mrb[0].mxu1 %v185_v17  ;;  %v2323_v17 = vpack.c.bf16 %v500_v12, %v496_v11  ;;  %v495_v18 = vld [vmem:[#allocation2 + $0x980] sm:$0xff]  ;;  %v2343_v13 = vpack.c.bf16 %v540_v8, %v536_v7 }
 0x14c   :  { %2558 = vmatpush1.bf16.msra.mxu1 %v2557_v19  ;;  %2304 = vmatprep.subr.bf16.mxu0 %v2303_v20  ;;  %v499_v19 = vld [vmem:[#allocation2 + $0x9a0] sm:$0xff]  ;;  %v497_v20 = vld [vmem:[#allocation2 + $0x990] sm:$0xff] }
 0x14d   :  { %2560 = vmatprep.subr.bf16.mxu1 %v2559_v24  ;;  %931 = vmatprep.mubr.f32.mxu0 %v188_v30  ;;  %v508_v24 = vld [vmem:[#allocation2 + $0x9e8] sm:$0xff]  ;;  %v2325_v27 = vpack.c.bf16 %v499_v19, %v495_v18  ;;  %v2581_v28 = vpack.c.bf16 %v501_v22, %v497_v20  ;;  %v541_v18 = vld [vmem:[#allocation2 + $0xaf0] sm:$0xff]  ;;  %v550_v22 = vld [vmem:[#allocation2 + $0xb38] sm:$0xff] }
 0x14e   :  { %1215 = vmatprep.mubr.f32.mxu1 %v188_v30  ;;  %v2327_v29 = vpack.c.bf16 %v508_v24, %v504_v23  ;;  %v503_v30 = vld [vmem:[#allocation2 + $0x9c0] sm:$0xff]  ;;  %v544_v19 = vld [vmem:[#allocation2 + $0xb08] sm:$0xff] }
 0x14f   :  { %2306 = vmatpush1.bf16.msra.mxu0 %v2305_v31  ;;  %v507_v31 = vld [vmem:[#allocation2 + $0x9e0] sm:$0xff]  ;;  %v548_v20 = vld [vmem:[#allocation2 + $0xb28] sm:$0xff] }
 0x150   :  { %2562 = vmatpush1.bf16.msra.mxu1 %v2561_v32  ;;  %2308 = vmatprep.subr.bf16.mxu0 %v2307_v33  ;;  %v505_v32 = vld [vmem:[#allocation2 + $0x9d0] sm:$0xff]  ;;  %v2583_v33 = vpack.c.bf16 %v510_v26, %v506_v25  ;;  %v2329_v39 = vpack.c.bf16 %v507_v31, %v503_v30  ;;  %v2347_v25 = vpack.c.bf16 %v548_v20, %v544_v19  ;;  %v543_v26 = vld [vmem:[#allocation2 + $0xb00] sm:$0xff]  ;;  %v552_v31 = vld [vmem:[#allocation2 + $0xb48] sm:$0xff] }
 0x151   :  { %2564 = vmatprep.subr.bf16.mxu1 %v2563_v37  ;;  %v514_v37 = vld [vmem:[#allocation2 + $0xa18] sm:$0xff]  ;;  %v2585_v40 = vpack.c.bf16 %v509_v34, %v505_v32  ;;  %v549_v30 = vld [vmem:[#allocation2 + $0xb30] sm:$0xff]  ;;  %v556_v32 = vld [vmem:[#allocation2 + $0xb68] sm:$0xff] }
 0x152   :  { %v558_v34 = vld [vmem:[#allocation2 + $0xb78] sm:$0xff]  ;;  %v187_v19 = vld [vmem:[%s3526_s0 + $0x20] sm:$0xff] }
 0x153   :  { %2310 = vmatpush1.bf16.msra.mxu0 %v2309_v43  ;;  %v515_v43 = vld [vmem:[#allocation2 + $0xa20] sm:$0xff] }
 0x154   :  { %2566 = vmatpush1.bf16.msra.mxu1 %v2565_v44  ;;  %2312 = vmatprep.subr.bf16.mxu0 %v2311_v45  ;;  %v513_v44 = vld [vmem:[#allocation2 + $0xa10] sm:$0xff]  ;;  %v2587_v45 = vpack.c.bf16 %v518_v38, %v514_v37  ;;  %v2333_v51 = vpack.c.bf16 %v515_v43, %v511_v42  ;;  %v2351_v37 = vpack.c.bf16 %v556_v32, %v552_v31  ;;  %v551_v38 = vld [vmem:[#allocation2 + $0xb40] sm:$0xff]  ;;  %v560_v43 = vld [vmem:[#allocation2 + $0xb88] sm:$0xff] }
 0x155   :  { %2568 = vmatprep.subr.bf16.mxu1 %v2567_v49  ;;  %v522_v49 = vld [vmem:[#allocation2 + $0xa58] sm:$0xff]  ;;  %v2589_v52 = vpack.c.bf16 %v517_v46, %v513_v44  ;;  %v557_v42 = vld [vmem:[#allocation2 + $0xb70] sm:$0xff]  ;;  %v564_v44 = vld [vmem:[#allocation2 + $0xba8] sm:$0xff] }
 0x156   :  { %v566_v46 = vld [vmem:[#allocation2 + $0xbb8] sm:$0xff] }
 0x157   :  { %2314 = vmatpush1.bf16.msra.mxu0 %v2313_v55  ;;  %v523_v55 = vld [vmem:[#allocation2 + $0xa60] sm:$0xff]  ;;  %v598_v31 = vld [vmem:[#allocation2 + $0xcb8] sm:$0xff] }
 0x158   :  { %2570 = vmatpush1.bf16.msra.mxu1 %v2569_v56  ;;  %2316 = vmatprep.subr.bf16.mxu0 %v2315_v57  ;;  %v521_v56 = vld [vmem:[#allocation2 + $0xa50] sm:$0xff]  ;;  %v2591_v57 = vpack.c.bf16 %v526_v50, %v522_v49  ;;  %v2337_v63 = vpack.c.bf16 %v523_v55, %v519_v54  ;;  %v2355_v49 = vpack.c.bf16 %v564_v44, %v560_v43  ;;  %v559_v50 = vld [vmem:[#allocation2 + $0xb80] sm:$0xff]  ;;  %v568_v55 = vld [vmem:[#allocation2 + $0xbc8] sm:$0xff] }
 0x159   :  { %2572 = vmatprep.subr.bf16.mxu1 %v2571_v61  ;;  %v530_v61 = vld [vmem:[#allocation2 + $0xa98] sm:$0xff]  ;;  %v2593_v0 = vpack.c.bf16 %v525_v58, %v521_v56  ;;  %v565_v54 = vld [vmem:[#allocation2 + $0xbb0] sm:$0xff]  ;;  %v572_v56 = vld [vmem:[#allocation2 + $0xbe8] sm:$0xff] }
 0x15a   :  { %v574_v58 = vld [vmem:[#allocation2 + $0xbf8] sm:$0xff] }
 0x15b   :  { %2318 = vmatpush1.bf16.msra.mxu0 %v2317_v3  ;;  %v531_v3 = vld [vmem:[#allocation2 + $0xaa0] sm:$0xff]  ;;  %v190_v32 = vld [vmem:[%s3526_s0 + $0x38] sm:$0xff] }
 0x15c   :  { %2574 = vmatpush1.bf16.msra.mxu1 %v2573_v4  ;;  %2320 = vmatprep.subr.bf16.mxu0 %v2319_v5  ;;  %v529_v4 = vld [vmem:[#allocation2 + $0xa90] sm:$0xff]  ;;  %v2595_v5 = vpack.c.bf16 %v534_v62, %v530_v61  ;;  %v2341_v11 = vpack.c.bf16 %v531_v3, %v527_v2  ;;  %v2359_v61 = vpack.c.bf16 %v572_v56, %v568_v55  ;;  %v567_v62 = vld [vmem:[#allocation2 + $0xbc0] sm:$0xff]  ;;  %v576_v3 = vld [vmem:[#allocation2 + $0xc08] sm:$0xff] }
 0x15d   :  { %2576 = vmatprep.subr.bf16.mxu1 %v2575_v9  ;;  %v538_v9 = vld [vmem:[#allocation2 + $0xad8] sm:$0xff]  ;;  %v2597_v12 = vpack.c.bf16 %v533_v6, %v529_v4  ;;  %v573_v2 = vld [vmem:[#allocation2 + $0xbf0] sm:$0xff]  ;;  %v580_v4 = vld [vmem:[#allocation2 + $0xc28] sm:$0xff] }
 0x15e   :  { %v582_v6 = vld [vmem:[#allocation2 + $0xc38] sm:$0xff] }
 0x15f   :  { %2322 = vmatpush1.bf16.msra.mxu0 %v2321_v15  ;;  %v539_v15 = vld [vmem:[#allocation2 + $0xae0] sm:$0xff]  ;;  %v602_v43 = vld [vmem:[#allocation2 + $0xcd8] sm:$0xff] }
 0x160   :  { %2578 = vmatpush1.bf16.msra.mxu1 %v2577_v16  ;;  %2324 = vmatprep.subr.bf16.mxu0 %v2323_v17  ;;  %v537_v16 = vld [vmem:[#allocation2 + $0xad0] sm:$0xff]  ;;  %v2599_v17 = vpack.c.bf16 %v542_v10, %v538_v9  ;;  %v2345_v23 = vpack.c.bf16 %v539_v15, %v535_v14  ;;  %v2363_v9 = vpack.c.bf16 %v580_v4, %v576_v3  ;;  %v575_v10 = vld [vmem:[#allocation2 + $0xc00] sm:$0xff]  ;;  %v584_v15 = vld [vmem:[#allocation2 + $0xc48] sm:$0xff] }
 0x161   :  { %2580 = vmatprep.subr.bf16.mxu1 %v2579_v21  ;;  %v546_v21 = vld [vmem:[#allocation2 + $0xb18] sm:$0xff]  ;;  %v2601_v24 = vpack.c.bf16 %v541_v18, %v537_v16  ;;  %v581_v14 = vld [vmem:[#allocation2 + $0xc30] sm:$0xff]  ;;  %v588_v16 = vld [vmem:[#allocation2 + $0xc68] sm:$0xff] }
 0x162   :  { %v590_v18 = vld [vmem:[#allocation2 + $0xc78] sm:$0xff] }
 0x163   :  { %2326 = vmatpush1.bf16.msra.mxu0 %v2325_v27  ;;  %v547_v27 = vld [vmem:[#allocation2 + $0xb20] sm:$0xff]  ;;  %v606_v44 = vld [vmem:[#allocation2 + $0xcf8] sm:$0xff] }
 0x164   :  { %2582 = vmatpush1.bf16.msra.mxu1 %v2581_v28  ;;  %2328 = vmatprep.subr.bf16.mxu0 %v2327_v29  ;;  %v545_v28 = vld [vmem:[#allocation2 + $0xb10] sm:$0xff]  ;;  %v2603_v29 = vpack.c.bf16 %v550_v22, %v546_v21  ;;  %v2349_v35 = vpack.c.bf16 %v547_v27, %v543_v26  ;;  %v2367_v22 = vpack.c.bf16 %v588_v16, %v584_v15  ;;  %v610_v55 = vld [vmem:[#allocation2 + $0xd18] sm:$0xff] }
 0x165   :  { %2584 = vmatprep.subr.bf16.mxu1 %v2583_v33  ;;  %v554_v33 = vld [vmem:[#allocation2 + $0xb58] sm:$0xff]  ;;  %v2605_v36 = vpack.c.bf16 %v549_v30, %v545_v28  ;;  %v589_v27 = vld [vmem:[#allocation2 + $0xc70] sm:$0xff]  ;;  %v592_v28 = vld [vmem:[#allocation2 + $0xc88] sm:$0xff] }
 0x166   :  { %v594_v30 = vld [vmem:[#allocation2 + $0xc98] sm:$0xff] }
 0x167   :  { %2330 = vmatpush1.bf16.msra.mxu0 %v2329_v39  ;;  %v555_v39 = vld [vmem:[#allocation2 + $0xb60] sm:$0xff]  ;;  %v614_v56 = vld [vmem:[#allocation2 + $0xd38] sm:$0xff] }
 0x168   :  { %2586 = vmatpush1.bf16.msra.mxu1 %v2585_v40  ;;  %2332 = vmatprep.subr.bf16.mxu0 %v2331_v41  ;;  %v553_v40 = vld [vmem:[#allocation2 + $0xb50] sm:$0xff]  ;;  %v2607_v41 = vpack.c.bf16 %v558_v34, %v554_v33  ;;  %v2353_v47 = vpack.c.bf16 %v555_v39, %v551_v38  ;;  %v2627_v39 = vpack.c.bf16 %v598_v31, %v594_v30  ;;  %v618_v3 = vld [vmem:[#allocation2 + $0xd58] sm:$0xff] }
 0x169   :  { %2588 = vmatprep.subr.bf16.mxu1 %v2587_v45  ;;  %v562_v45 = vld [vmem:[#allocation2 + $0xb98] sm:$0xff]  ;;  %v2609_v48 = vpack.c.bf16 %v557_v42, %v553_v40  ;;  %v593_v38 = vld [vmem:[#allocation2 + $0xc90] sm:$0xff]  ;;  %v604_v42 = vld [vmem:[#allocation2 + $0xce8] sm:$0xff] }
 0x16a   :  { %v597_v40 = vld [vmem:[#allocation2 + $0xcb0] sm:$0xff]  ;;  %v622_v4 = vld [vmem:[#allocation2 + $0xd78] sm:$0xff] }
 0x16b   :  { %2334 = vmatpush1.bf16.msra.mxu0 %v2333_v51  ;;  %v563_v51 = vld [vmem:[#allocation2 + $0xba0] sm:$0xff]  ;;  %v626_v15 = vld [vmem:[#allocation2 + $0xd98] sm:$0xff] }
 0x16c   :  { %2590 = vmatpush1.bf16.msra.mxu1 %v2589_v52  ;;  %2336 = vmatprep.subr.bf16.mxu0 %v2335_v53  ;;  %v561_v52 = vld [vmem:[#allocation2 + $0xb90] sm:$0xff]  ;;  %v2611_v53 = vpack.c.bf16 %v566_v46, %v562_v45  ;;  %v2357_v59 = vpack.c.bf16 %v563_v51, %v559_v50  ;;  %v2629_v46 = vpack.c.bf16 %v597_v40, %v593_v38  ;;  %v630_v16 = vld [vmem:[#allocation2 + $0xdb8] sm:$0xff]  ;;  %v644_v38 = vld [vmem:[#allocation2 + $0xe28] sm:$0xff] }
 0x16d   :  { %2592 = vmatprep.subr.bf16.mxu1 %v2591_v57  ;;  %v570_v57 = vld [vmem:[#allocation2 + $0xbd8] sm:$0xff]  ;;  %v2613_v60 = vpack.c.bf16 %v565_v54, %v561_v52  ;;  %v601_v50 = vld [vmem:[#allocation2 + $0xcd0] sm:$0xff]  ;;  %v2631_v51 = vpack.c.bf16 %v606_v44, %v602_v43  ;;  %v612_v54 = vld [vmem:[#allocation2 + $0xd28] sm:$0xff] }
 0x16e   :  { %v605_v52 = vld [vmem:[#allocation2 + $0xcf0] sm:$0xff]  ;;  %v646_v40 = vld [vmem:[#allocation2 + $0xe38] sm:$0xff]  ;;  %v639_v44 = vld [vmem:[#allocation2 + $0xe00] sm:$0xff] }
 0x16f   :  { %2338 = vmatpush1.bf16.msra.mxu0 %v2337_v63  ;;  %v571_v63 = vld [vmem:[#allocation2 + $0xbe0] sm:$0xff] }
 0x170   :  { %2594 = vmatpush1.bf16.msra.mxu1 %v2593_v0  ;;  %2340 = vmatprep.subr.bf16.mxu0 %v2339_v1  ;;  %v569_v0 = vld [vmem:[#allocation2 + $0xbd0] sm:$0xff]  ;;  %v2615_v1 = vpack.c.bf16 %v574_v58, %v570_v57  ;;  %v2361_v7 = vpack.c.bf16 %v571_v63, %v567_v62  ;;  %v2633_v58 = vpack.c.bf16 %v605_v52, %v601_v50  ;;  %v652_v50 = vld [vmem:[#allocation2 + $0xe68] sm:$0xff]  ;;  %v654_v52 = vld [vmem:[#allocation2 + $0xe78] sm:$0xff] }
 0x171   :  { %2596 = vmatprep.subr.bf16.mxu1 %v2595_v5  ;;  %v578_v5 = vld [vmem:[#allocation2 + $0xc18] sm:$0xff]  ;;  %v2617_v8 = vpack.c.bf16 %v573_v2, %v569_v0  ;;  %v609_v62 = vld [vmem:[#allocation2 + $0xd10] sm:$0xff]  ;;  %v2635_v63 = vpack.c.bf16 %v614_v56, %v610_v55  ;;  %v620_v2 = vld [vmem:[#allocation2 + $0xd68] sm:$0xff] }
 0x172   :  { %v613_v0 = vld [vmem:[#allocation2 + $0xd30] sm:$0xff]  ;;  %v647_v56 = vld [vmem:[#allocation2 + $0xe40] sm:$0xff] }
 0x173   :  { %2342 = vmatpush1.bf16.msra.mxu0 %v2341_v11  ;;  %v579_v11 = vld [vmem:[#allocation2 + $0xc20] sm:$0xff] }
 0x174   :  { %2598 = vmatpush1.bf16.msra.mxu1 %v2597_v12  ;;  %2344 = vmatprep.subr.bf16.mxu0 %v2343_v13  ;;  %v577_v12 = vld [vmem:[#allocation2 + $0xc10] sm:$0xff]  ;;  %v2619_v13 = vpack.c.bf16 %v582_v6, %v578_v5  ;;  %v2365_v20 = vpack.c.bf16 %v579_v11, %v575_v10  ;;  %v2637_v6 = vpack.c.bf16 %v613_v0, %v609_v62  ;;  %v660_v62 = vld [vmem:[#allocation2 + $0xea8] sm:$0xff]  ;;  %v662_v0 = vld [vmem:[#allocation2 + $0xeb8] sm:$0xff] }
 0x175   :  { %2600 = vmatprep.subr.bf16.mxu1 %v2599_v17  ;;  %v586_v17 = vld [vmem:[#allocation2 + $0xc58] sm:$0xff]  ;;  %v2621_v21 = vpack.c.bf16 %v581_v14, %v577_v12  ;;  %v617_v10 = vld [vmem:[#allocation2 + $0xd50] sm:$0xff]  ;;  %v2639_v11 = vpack.c.bf16 %v622_v4, %v618_v3  ;;  %v628_v14 = vld [vmem:[#allocation2 + $0xda8] sm:$0xff] }
 0x176   :  { %v2623_v26 = vpack.c.bf16 %v590_v18, %v586_v17  ;;  %v621_v12 = vld [vmem:[#allocation2 + $0xd70] sm:$0xff]  ;;  %v655_v4 = vld [vmem:[#allocation2 + $0xe80] sm:$0xff] }
 0x177   :  { %2346 = vmatpush1.bf16.msra.mxu0 %v2345_v23  ;;  %v583_v23 = vld [vmem:[#allocation2 + $0xc40] sm:$0xff]  ;;  %v2641_v18 = vpack.c.bf16 %v621_v12, %v617_v10  ;;  %v668_v10 = vld [vmem:[#allocation2 + $0xee8] sm:$0xff]  ;;  %v670_v12 = vld [vmem:[#allocation2 + $0xef8] sm:$0xff] }
 0x178   :  { %2602 = vmatpush1.bf16.msra.mxu1 %v2601_v24  ;;  %2348 = vmatprep.subr.bf16.mxu0 %v2347_v25  ;;  %v587_v24 = vld [vmem:[#allocation2 + $0xc60] sm:$0xff]  ;;  %v585_v25 = vld [vmem:[#allocation2 + $0xc50] sm:$0xff] }
 0x179   :  { %2604 = vmatprep.subr.bf16.mxu1 %v2603_v29  ;;  %v596_v29 = vld [vmem:[#allocation2 + $0xca8] sm:$0xff]  ;;  %v2369_v33 = vpack.c.bf16 %v587_v24, %v583_v23  ;;  %v2625_v34 = vpack.c.bf16 %v589_v27, %v585_v25  ;;  %v2643_v23 = vpack.c.bf16 %v630_v16, %v626_v15  ;;  %v629_v24 = vld [vmem:[#allocation2 + $0xdb0] sm:$0xff]  ;;  %v634_v27 = vld [vmem:[#allocation2 + $0xdd8] sm:$0xff] }
 0x17a   :  { %v632_v25 = vld [vmem:[#allocation2 + $0xdc8] sm:$0xff]  ;;  %v663_v16 = vld [vmem:[#allocation2 + $0xec0] sm:$0xff] }
 0x17b   :  { %2350 = vmatpush1.bf16.msra.mxu0 %v2349_v35  ;;  %v2371_v35 = vpack.c.bf16 %v596_v29, %v592_v28  ;;  %v638_v28 = vld [vmem:[#allocation2 + $0xdf8] sm:$0xff] }
 0x17c   :  { %2606 = vmatpush1.bf16.msra.mxu1 %v2605_v36  ;;  %2352 = vmatprep.subr.bf16.mxu0 %v2351_v37  ;;  %v591_v36 = vld [vmem:[#allocation2 + $0xc80] sm:$0xff] }
 0x17d   :  { %2608 = vmatprep.subr.bf16.mxu1 %v2607_v41  ;;  %v595_v37 = vld [vmem:[#allocation2 + $0xca0] sm:$0xff]  ;;  %v600_v41 = vld [vmem:[#allocation2 + $0xcc8] sm:$0xff] }
 0x17e   :  { %v2373_v45 = vpack.c.bf16 %v595_v37, %v591_v36  ;;  %v637_v36 = vld [vmem:[#allocation2 + $0xdf0] sm:$0xff]  ;;  %v640_v37 = vld [vmem:[#allocation2 + $0xe08] sm:$0xff] }
 0x17f   :  { %2354 = vmatpush1.bf16.msra.mxu0 %v2353_v47  ;;  %v2375_v47 = vpack.c.bf16 %v604_v42, %v600_v41  ;;  %v2395_v43 = vpack.c.bf16 %v644_v38, %v640_v37 }
 0x180   :  { %2610 = vmatpush1.bf16.msra.mxu1 %v2609_v48  ;;  %2356 = vmatprep.subr.bf16.mxu0 %v2355_v49  ;;  %v599_v48 = vld [vmem:[#allocation2 + $0xcc0] sm:$0xff] }
 0x181   :  { %2612 = vmatprep.subr.bf16.mxu1 %v2611_v53  ;;  %v603_v49 = vld [vmem:[#allocation2 + $0xce0] sm:$0xff]  ;;  %v608_v53 = vld [vmem:[#allocation2 + $0xd08] sm:$0xff] }
 0x182   :  { %v2377_v57 = vpack.c.bf16 %v603_v49, %v599_v48  ;;  %v645_v48 = vld [vmem:[#allocation2 + $0xe30] sm:$0xff]  ;;  %v648_v49 = vld [vmem:[#allocation2 + $0xe48] sm:$0xff] }
 0x183   :  { %2358 = vmatpush1.bf16.msra.mxu0 %v2357_v59  ;;  %v2379_v59 = vpack.c.bf16 %v612_v54, %v608_v53  ;;  %v2399_v55 = vpack.c.bf16 %v652_v50, %v648_v49 }
 0x184   :  { %2614 = vmatpush1.bf16.msra.mxu1 %v2613_v60  ;;  %2360 = vmatprep.subr.bf16.mxu0 %v2359_v61  ;;  %v607_v60 = vld [vmem:[#allocation2 + $0xd00] sm:$0xff] }
 0x185   :  { %2616 = vmatprep.subr.bf16.mxu1 %v2615_v1  ;;  %v611_v61 = vld [vmem:[#allocation2 + $0xd20] sm:$0xff]  ;;  %v616_v1 = vld [vmem:[#allocation2 + $0xd48] sm:$0xff] }
 0x186   :  { %v2381_v5 = vpack.c.bf16 %v611_v61, %v607_v60  ;;  %v653_v60 = vld [vmem:[#allocation2 + $0xe70] sm:$0xff]  ;;  %v656_v61 = vld [vmem:[#allocation2 + $0xe88] sm:$0xff] }
 0x187   :  { %2362 = vmatpush1.bf16.msra.mxu0 %v2361_v7  ;;  %v2383_v7 = vpack.c.bf16 %v620_v2, %v616_v1  ;;  %v2403_v3 = vpack.c.bf16 %v660_v62, %v656_v61 }
 0x188   :  { %2618 = vmatpush1.bf16.msra.mxu1 %v2617_v8  ;;  %2364 = vmatprep.subr.bf16.mxu0 %v2363_v9  ;;  %v615_v8 = vld [vmem:[#allocation2 + $0xd40] sm:$0xff] }
 0x189   :  { %2620 = vmatprep.subr.bf16.mxu1 %v2619_v13  ;;  %v619_v9 = vld [vmem:[#allocation2 + $0xd60] sm:$0xff]  ;;  %v624_v13 = vld [vmem:[#allocation2 + $0xd88] sm:$0xff] }
 0x18a   :  { %932 = vmatmul.mubr.f32.vlgmr.msra.gmra.mrb[0].mxu0 %v187_v19  ;;  %v2385_v17 = vpack.c.bf16 %v619_v9, %v615_v8  ;;  %v661_v8 = vld [vmem:[#allocation2 + $0xeb0] sm:$0xff]  ;;  %v664_v9 = vld [vmem:[#allocation2 + $0xec8] sm:$0xff] }
 0x18b   :  { %2366 = vmatpush1.bf16.msra.mxu0 %v2365_v20  ;;  %1216 = vmatmul.mubr.f32.vlgmr.msra.gmra.mrb[0].mxu1 %v187_v19  ;;  %v2387_v19 = vpack.c.bf16 %v628_v14, %v624_v13  ;;  %v623_v20 = vld [vmem:[#allocation2 + $0xd80] sm:$0xff]  ;;  %v2407_v15 = vpack.c.bf16 %v668_v10, %v664_v9 }
 0x18c   :  { %2622 = vmatpush1.bf16.msra.mxu1 %v2621_v21  ;;  %2368 = vmatprep.subr.bf16.mxu0 %v2367_v22  ;;  %v627_v21 = vld [vmem:[#allocation2 + $0xda0] sm:$0xff]  ;;  %v625_v22 = vld [vmem:[#allocation2 + $0xd90] sm:$0xff] }
 0x18d   :  { %2624 = vmatprep.subr.bf16.mxu1 %v2623_v26  ;;  %1002 = vmatprep.mubr.f32.mxu0 %v190_v32  ;;  %v636_v26 = vld [vmem:[#allocation2 + $0xde8] sm:$0xff]  ;;  %v2389_v29 = vpack.c.bf16 %v627_v21, %v623_v20  ;;  %v2645_v30 = vpack.c.bf16 %v629_v24, %v625_v22  ;;  %v669_v20 = vld [vmem:[#allocation2 + $0xef0] sm:$0xff]  ;;  %v678_v24 = vld [vmem:[#allocation2 + $0xf38] sm:$0xff] }
 0x18e   :  { %1286 = vmatprep.mubr.f32.mxu1 %v190_v32  ;;  %v2391_v31 = vpack.c.bf16 %v636_v26, %v632_v25  ;;  %v631_v32 = vld [vmem:[#allocation2 + $0xdc0] sm:$0xff]  ;;  %v672_v21 = vld [vmem:[#allocation2 + $0xf08] sm:$0xff] }
 0x18f   :  { %2370 = vmatpush1.bf16.msra.mxu0 %v2369_v33  ;;  %v635_v33 = vld [vmem:[#allocation2 + $0xde0] sm:$0xff]  ;;  %v676_v22 = vld [vmem:[#allocation2 + $0xf28] sm:$0xff] }
 0x190   :  { %2626 = vmatpush1.bf16.msra.mxu1 %v2625_v34  ;;  %2372 = vmatprep.subr.bf16.mxu0 %v2371_v35  ;;  %v633_v34 = vld [vmem:[#allocation2 + $0xdd0] sm:$0xff]  ;;  %v2647_v35 = vpack.c.bf16 %v638_v28, %v634_v27  ;;  %v2393_v41 = vpack.c.bf16 %v635_v33, %v631_v32  ;;  %v2411_v27 = vpack.c.bf16 %v676_v22, %v672_v21  ;;  %v671_v28 = vld [vmem:[#allocation2 + $0xf00] sm:$0xff]  ;;  %v680_v33 = vld [vmem:[#allocation2 + $0xf48] sm:$0xff] }
 0x191   :  { %2628 = vmatprep.subr.bf16.mxu1 %v2627_v39  ;;  %v642_v39 = vld [vmem:[#allocation2 + $0xe18] sm:$0xff]  ;;  %v2649_v42 = vpack.c.bf16 %v637_v36, %v633_v34  ;;  %v677_v32 = vld [vmem:[#allocation2 + $0xf30] sm:$0xff]  ;;  %v684_v34 = vld [vmem:[#allocation2 + $0xf68] sm:$0xff] }
 0x192   :  { %v686_v36 = vld [vmem:[#allocation2 + $0xf78] sm:$0xff]  ;;  %v1297_v10 = vld [vmem:[#allocation6] sm:$0xff] }
 0x193   :  { %2374 = vmatpush1.bf16.msra.mxu0 %v2373_v45  ;;  %v643_v45 = vld [vmem:[#allocation2 + $0xe20] sm:$0xff] }
 0x194   :  { %2630 = vmatpush1.bf16.msra.mxu1 %v2629_v46  ;;  %2376 = vmatprep.subr.bf16.mxu0 %v2375_v47  ;;  %v641_v46 = vld [vmem:[#allocation2 + $0xe10] sm:$0xff]  ;;  %v2651_v47 = vpack.c.bf16 %v646_v40, %v642_v39  ;;  %v2397_v53 = vpack.c.bf16 %v643_v45, %v639_v44  ;;  %v2415_v39 = vpack.c.bf16 %v684_v34, %v680_v33  ;;  %v679_v40 = vld [vmem:[#allocation2 + $0xf40] sm:$0xff]  ;;  %v688_v45 = vld [vmem:[#allocation2 + $0xf88] sm:$0xff] }
 0x195   :  { %2632 = vmatprep.subr.bf16.mxu1 %v2631_v51  ;;  %v650_v51 = vld [vmem:[#allocation2 + $0xe58] sm:$0xff]  ;;  %v2653_v54 = vpack.c.bf16 %v645_v48, %v641_v46  ;;  %v685_v44 = vld [vmem:[#allocation2 + $0xf70] sm:$0xff]  ;;  %v692_v46 = vld [vmem:[#allocation2 + $0xfa8] sm:$0xff] }
 0x196   :  { %v694_v48 = vld [vmem:[#allocation2 + $0xfb8] sm:$0xff] }
 0x197   :  { %2378 = vmatpush1.bf16.msra.mxu0 %v2377_v57  ;;  %v651_v57 = vld [vmem:[#allocation2 + $0xe60] sm:$0xff] }
 0x198   :  { %2634 = vmatpush1.bf16.msra.mxu1 %v2633_v58  ;;  %2380 = vmatprep.subr.bf16.mxu0 %v2379_v59  ;;  %v649_v58 = vld [vmem:[#allocation2 + $0xe50] sm:$0xff]  ;;  %v2655_v59 = vpack.c.bf16 %v654_v52, %v650_v51  ;;  %v2401_v1 = vpack.c.bf16 %v651_v57, %v647_v56  ;;  %v2419_v51 = vpack.c.bf16 %v692_v46, %v688_v45  ;;  %v687_v52 = vld [vmem:[#allocation2 + $0xf80] sm:$0xff]  ;;  %v696_v57 = vld [vmem:[#allocation2 + $0xfc8] sm:$0xff] }
 0x199   :  { %2636 = vmatprep.subr.bf16.mxu1 %v2635_v63  ;;  %v658_v63 = vld [vmem:[#allocation2 + $0xe98] sm:$0xff]  ;;  %v2657_v2 = vpack.c.bf16 %v653_v60, %v649_v58  ;;  %v693_v56 = vld [vmem:[#allocation2 + $0xfb0] sm:$0xff]  ;;  %v700_v58 = vld [vmem:[#allocation2 + $0xfe8] sm:$0xff] }
 0x19a   :  { %v702_v60 = vld [vmem:[#allocation2 + $0xff8] sm:$0xff] }
 0x19b   :  { %2382 = vmatpush1.bf16.msra.mxu0 %v2381_v5  ;;  %v659_v5 = vld [vmem:[#allocation2 + $0xea0] sm:$0xff] }
 0x19c   :  { %2638 = vmatpush1.bf16.msra.mxu1 %v2637_v6  ;;  %2384 = vmatprep.subr.bf16.mxu0 %v2383_v7  ;;  %v657_v6 = vld [vmem:[#allocation2 + $0xe90] sm:$0xff]  ;;  %v2659_v7 = vpack.c.bf16 %v662_v0, %v658_v63  ;;  %v2405_v13 = vpack.c.bf16 %v659_v5, %v655_v4  ;;  %v2423_v63 = vpack.c.bf16 %v700_v58, %v696_v57  ;;  %v695_v0 = vld [vmem:[#allocation2 + $0xfc0] sm:$0xff] }
 0x19d   :  { %2640 = vmatprep.subr.bf16.mxu1 %v2639_v11  ;;  %v666_v11 = vld [vmem:[#allocation2 + $0xed8] sm:$0xff]  ;;  %v2661_v14 = vpack.c.bf16 %v661_v8, %v657_v6  ;;  %v701_v4 = vld [vmem:[#allocation2 + $0xff0] sm:$0xff] }
 0x19e   :  { %v1298_v5 = vld [vmem:[#allocation6 + $0x8] sm:$0xff]  ;;  %v1300_v6 = vld [vmem:[#allocation6 + $0x18] sm:$0xff] }
 0x19f   :  { %2386 = vmatpush1.bf16.msra.mxu0 %v2385_v17  ;;  %v667_v17 = vld [vmem:[#allocation2 + $0xee0] sm:$0xff]  ;;  %v2683_v9 = vpack.c.bf16 %v1300_v6, %v1298_v5 }
 0x1a0   :  { %2642 = vmatpush1.bf16.msra.mxu1 %v2641_v18  ;;  %2388 = vmatprep.subr.bf16.mxu0 %v2387_v19  ;;  %v665_v18 = vld [vmem:[#allocation2 + $0xed0] sm:$0xff]  ;;  %v2663_v19 = vpack.c.bf16 %v670_v12, %v666_v11  ;;  %v2409_v25 = vpack.c.bf16 %v667_v17, %v663_v16  ;;  %v1301_v17 = vld [vmem:[#allocation6 + $0x20] sm:$0xff] }
 0x1a1   :  { %2644 = vmatprep.subr.bf16.mxu1 %v2643_v23  ;;  %v674_v23 = vld [vmem:[#allocation2 + $0xf18] sm:$0xff]  ;;  %v2665_v26 = vpack.c.bf16 %v669_v20, %v665_v18  ;;  %v1302_v12 = vld [vmem:[#allocation6 + $0x28] sm:$0xff] }
 0x1a2   :  { %v1299_v11 = vld [vmem:[#allocation6 + $0x10] sm:$0xff]  ;;  %v1308_v20 = vld [vmem:[#allocation6 + $0x58] sm:$0xff] }
 0x1a3   :  { %2390 = vmatpush1.bf16.msra.mxu0 %v2389_v29  ;;  %v675_v29 = vld [vmem:[#allocation2 + $0xf20] sm:$0xff]  ;;  %v1303_v18 = vld [vmem:[#allocation6 + $0x30] sm:$0xff] }
 0x1a4   :  { %2646 = vmatpush1.bf16.msra.mxu1 %v2645_v30  ;;  %2392 = vmatprep.subr.bf16.mxu0 %v2391_v31  ;;  %v673_v30 = vld [vmem:[#allocation2 + $0xf10] sm:$0xff]  ;;  %v2667_v31 = vpack.c.bf16 %v678_v24, %v674_v23  ;;  %v2413_v37 = vpack.c.bf16 %v675_v29, %v671_v28  ;;  %v2689_v21 = vpack.c.bf16 %v1303_v18, %v1301_v17  ;;  %v1305_v23 = vld [vmem:[#allocation6 + $0x40] sm:$0xff] }
 0x1a5   :  { %2648 = vmatprep.subr.bf16.mxu1 %v2647_v35  ;;  %v682_v35 = vld [vmem:[#allocation2 + $0xf58] sm:$0xff]  ;;  %v2669_v38 = vpack.c.bf16 %v677_v32, %v673_v30  ;;  %v1309_v29 = vld [vmem:[#allocation6 + $0x60] sm:$0xff] }
 0x1a6   :  { %v1307_v24 = vld [vmem:[#allocation6 + $0x50] sm:$0xff]  ;;  %v1316_v32 = vld [vmem:[#allocation6 + $0x98] sm:$0xff] }
 0x1a7   :  { %2394 = vmatpush1.bf16.msra.mxu0 %v2393_v41  ;;  %v683_v41 = vld [vmem:[#allocation2 + $0xf60] sm:$0xff]  ;;  %v1311_v30 = vld [vmem:[#allocation6 + $0x70] sm:$0xff] }
 0x1a8   :  { %2650 = vmatpush1.bf16.msra.mxu1 %v2649_v42  ;;  %2396 = vmatprep.subr.bf16.mxu0 %v2395_v43  ;;  %v681_v42 = vld [vmem:[#allocation2 + $0xf50] sm:$0xff]  ;;  %v2671_v43 = vpack.c.bf16 %v686_v36, %v682_v35  ;;  %v2417_v49 = vpack.c.bf16 %v683_v41, %v679_v40  ;;  %v2697_v33 = vpack.c.bf16 %v1311_v30, %v1309_v29  ;;  %v1313_v35 = vld [vmem:[#allocation6 + $0x80] sm:$0xff] }
 0x1a9   :  { %2652 = vmatprep.subr.bf16.mxu1 %v2651_v47  ;;  %v690_v47 = vld [vmem:[#allocation2 + $0xf98] sm:$0xff]  ;;  %v2673_v50 = vpack.c.bf16 %v685_v44, %v681_v42  ;;  %v1317_v41 = vld [vmem:[#allocation6 + $0xa0] sm:$0xff] }
 0x1aa   :  { %v1315_v36 = vld [vmem:[#allocation6 + $0x90] sm:$0xff]  ;;  %v1324_v44 = vld [vmem:[#allocation6 + $0xd8] sm:$0xff] }
 0x1ab   :  { %2398 = vmatpush1.bf16.msra.mxu0 %v2397_v53  ;;  %v691_v53 = vld [vmem:[#allocation2 + $0xfa0] sm:$0xff]  ;;  %v1319_v42 = vld [vmem:[#allocation6 + $0xb0] sm:$0xff] }
 0x1ac   :  { %2654 = vmatpush1.bf16.msra.mxu1 %v2653_v54  ;;  %2400 = vmatprep.subr.bf16.mxu0 %v2399_v55  ;;  %v689_v54 = vld [vmem:[#allocation2 + $0xf90] sm:$0xff]  ;;  %v2675_v55 = vpack.c.bf16 %v694_v48, %v690_v47  ;;  %v2421_v61 = vpack.c.bf16 %v691_v53, %v687_v52  ;;  %v2705_v45 = vpack.c.bf16 %v1319_v42, %v1317_v41  ;;  %v1321_v47 = vld [vmem:[#allocation6 + $0xc0] sm:$0xff]  ;;  %v1364_v41 = vld [vmem:[#allocation6 + $0x218] sm:$0xff] }
 0x1ad   :  { %2656 = vmatprep.subr.bf16.mxu1 %v2655_v59  ;;  %v698_v59 = vld [vmem:[#allocation2 + $0xfd8] sm:$0xff]  ;;  %v2677_v62 = vpack.c.bf16 %v693_v56, %v689_v54  ;;  %v1325_v53 = vld [vmem:[#allocation6 + $0xe0] sm:$0xff] }
 0x1ae   :  { %v1323_v48 = vld [vmem:[#allocation6 + $0xd0] sm:$0xff]  ;;  %v1332_v56 = vld [vmem:[#allocation6 + $0x118] sm:$0xff] }
 0x1af   :  { %2402 = vmatpush1.bf16.msra.mxu0 %v2401_v1  ;;  %v699_v1 = vld [vmem:[#allocation2 + $0xfe0] sm:$0xff]  ;;  %v1327_v54 = vld [vmem:[#allocation6 + $0xf0] sm:$0xff] }
 0x1b0   :  { %2658 = vmatpush1.bf16.msra.mxu1 %v2657_v2  ;;  %2404 = vmatprep.subr.bf16.mxu0 %v2403_v3  ;;  %v697_v2 = vld [vmem:[#allocation2 + $0xfd0] sm:$0xff]  ;;  %v2679_v3 = vpack.c.bf16 %v702_v60, %v698_v59  ;;  %v2713_v57 = vpack.c.bf16 %v1327_v54, %v1325_v53  ;;  %v1329_v59 = vld [vmem:[#allocation6 + $0x100] sm:$0xff] }
 0x1b1   :  { %2660 = vmatprep.subr.bf16.mxu1 %v2659_v7  ;;  %v2425_v7 = vpack.c.bf16 %v699_v1, %v695_v0  ;;  %v2681_v8 = vpack.c.bf16 %v701_v4, %v697_v2  ;;  %v1331_v60 = vld [vmem:[#allocation6 + $0x110] sm:$0xff]  ;;  %v1333_v1 = vld [vmem:[#allocation6 + $0x120] sm:$0xff]  ;;  %v1340_v4 = vld [vmem:[#allocation6 + $0x158] sm:$0xff] }
 0x1b2   :  { %v1335_v2 = vld [vmem:[#allocation6 + $0x130] sm:$0xff]  ;;  %v1584_v53 = vld [vmem:[#allocation9 + $0x18] sm:$0xff]  ;;  %v1601_v54 = vld [vmem:[#allocation9 + $0xa0] sm:$0xff] }
 0x1b3   :  { %2406 = vmatpush1.bf16.msra.mxu0 %v2405_v13  ;;  %v1304_v13 = vld [vmem:[#allocation6 + $0x38] sm:$0xff]  ;;  %v2721_v5 = vpack.c.bf16 %v1335_v2, %v1333_v1  ;;  %v1605_v2 = vld [vmem:[#allocation9 + $0xc0] sm:$0xff] }
 0x1b4   :  { %2662 = vmatpush1.bf16.msra.mxu1 %v2661_v14  ;;  %2408 = vmatprep.subr.bf16.mxu0 %v2407_v15  ;;  %v189_v14 = vld [vmem:[%s3526_s0 + $0x30] sm:$0xff]  ;;  %v2685_v15 = vpack.c.bf16 %v1299_v11, %v1297_v10  ;;  %v2687_v16 = vpack.c.bf16 %v1304_v13, %v1302_v12  ;;  %v1344_v10 = vld [vmem:[#allocation6 + $0x178] sm:$0xff]  ;;  %v1341_v13 = vld [vmem:[#allocation6 + $0x160] sm:$0xff] }
 0x1b5   :  { %2664 = vmatprep.subr.bf16.mxu1 %v2663_v19  ;;  %v1306_v19 = vld [vmem:[#allocation6 + $0x48] sm:$0xff]  ;;  %v1588_v1 = vld [vmem:[#allocation9 + $0x38] sm:$0xff] }
 0x1b6   :  { %v2691_v22 = vpack.c.bf16 %v1308_v20, %v1306_v19  ;;  %v1345_v19 = vld [vmem:[#allocation6 + $0x180] sm:$0xff]  ;;  %v1347_v20 = vld [vmem:[#allocation6 + $0x190] sm:$0xff] }
 0x1b7   :  { %2410 = vmatpush1.bf16.msra.mxu0 %v2409_v25  ;;  %v1310_v25 = vld [vmem:[#allocation6 + $0x68] sm:$0xff] }
 0x1b8   :  { %2666 = vmatpush1.bf16.msra.mxu1 %v2665_v26  ;;  %2412 = vmatprep.subr.bf16.mxu0 %v2411_v27  ;;  %v1312_v26 = vld [vmem:[#allocation6 + $0x78] sm:$0xff]  ;;  %v2693_v27 = vpack.c.bf16 %v1307_v24, %v1305_v23  ;;  %v2733_v23 = vpack.c.bf16 %v1347_v20, %v1345_v19 }
 0x1b9   :  { %2668 = vmatprep.subr.bf16.mxu1 %v2667_v31  ;;  %v2695_v28 = vpack.c.bf16 %v1312_v26, %v1310_v25  ;;  %v1314_v31 = vld [vmem:[#allocation6 + $0x88] sm:$0xff]  ;;  %v1349_v25 = vld [vmem:[#allocation6 + $0x1a0] sm:$0xff]  ;;  %v1351_v26 = vld [vmem:[#allocation6 + $0x1b0] sm:$0xff] }
 0x1ba   :  { %v2699_v34 = vpack.c.bf16 %v1316_v32, %v1314_v31  ;;  %v2737_v29 = vpack.c.bf16 %v1351_v26, %v1349_v25  ;;  %v1353_v31 = vld [vmem:[#allocation6 + $0x1c0] sm:$0xff]  ;;  %v1355_v32 = vld [vmem:[#allocation6 + $0x1d0] sm:$0xff] }
 0x1bb   :  { %2414 = vmatpush1.bf16.msra.mxu0 %v2413_v37  ;;  %v1318_v37 = vld [vmem:[#allocation6 + $0xa8] sm:$0xff] }
 0x1bc   :  { %2670 = vmatpush1.bf16.msra.mxu1 %v2669_v38  ;;  %2416 = vmatprep.subr.bf16.mxu0 %v2415_v39  ;;  %v1320_v38 = vld [vmem:[#allocation6 + $0xb8] sm:$0xff]  ;;  %v2701_v39 = vpack.c.bf16 %v1315_v36, %v1313_v35 }
 0x1bd   :  { %2672 = vmatprep.subr.bf16.mxu1 %v2671_v43  ;;  %v2703_v40 = vpack.c.bf16 %v1320_v38, %v1318_v37  ;;  %v1322_v43 = vld [vmem:[#allocation6 + $0xc8] sm:$0xff]  ;;  %v1360_v35 = vld [vmem:[#allocation6 + $0x1f8] sm:$0xff]  ;;  %v1357_v37 = vld [vmem:[#allocation6 + $0x1e0] sm:$0xff] }
 0x1be   :  { %v2707_v46 = vpack.c.bf16 %v1324_v44, %v1322_v43  ;;  %v1359_v38 = vld [vmem:[#allocation6 + $0x1f0] sm:$0xff]  ;;  %v1597_v43 = vld [vmem:[#allocation9 + $0x80] sm:$0xff] }
 0x1bf   :  { %2418 = vmatpush1.bf16.msra.mxu0 %v2417_v49  ;;  %v1326_v49 = vld [vmem:[#allocation6 + $0xe8] sm:$0xff] }
 0x1c0   :  { %2674 = vmatpush1.bf16.msra.mxu1 %v2673_v50  ;;  %2420 = vmatprep.subr.bf16.mxu0 %v2419_v51  ;;  %v1328_v50 = vld [vmem:[#allocation6 + $0xf8] sm:$0xff]  ;;  %v2709_v51 = vpack.c.bf16 %v1323_v48, %v1321_v47  ;;  %v1598_v44 = vld [vmem:[#allocation9 + $0x88] sm:$0xff] }
 0x1c1   :  { %2676 = vmatprep.subr.bf16.mxu1 %v2675_v55  ;;  %v2711_v52 = vpack.c.bf16 %v1328_v50, %v1326_v49  ;;  %v1330_v55 = vld [vmem:[#allocation6 + $0x108] sm:$0xff]  ;;  %v1599_v48 = vld [vmem:[#allocation9 + $0x90] sm:$0xff]  ;;  %v1600_v49 = vld [vmem:[#allocation9 + $0x98] sm:$0xff] }
 0x1c2   :  { %v2715_v58 = vpack.c.bf16 %v1332_v56, %v1330_v55  ;;  %v1582_v47 = vld [vmem:[#allocation9 + $0x8] sm:$0xff] }
 0x1c3   :  { %2422 = vmatpush1.bf16.msra.mxu0 %v2421_v61  ;;  %v1334_v61 = vld [vmem:[#allocation6 + $0x128] sm:$0xff] }
 0x1c4   :  { %2678 = vmatpush1.bf16.msra.mxu1 %v2677_v62  ;;  %2424 = vmatprep.subr.bf16.mxu0 %v2423_v63  ;;  %v1336_v62 = vld [vmem:[#allocation6 + $0x138] sm:$0xff]  ;;  %v2717_v63 = vpack.c.bf16 %v1331_v60, %v1329_v59  ;;  %v1602_v55 = vld [vmem:[#allocation9 + $0xa8] sm:$0xff] }
 0x1c5   :  { %2680 = vmatprep.subr.bf16.mxu1 %v2679_v3  ;;  %v2719_v0 = vpack.c.bf16 %v1336_v62, %v1334_v61  ;;  %v1338_v3 = vld [vmem:[#allocation6 + $0x148] sm:$0xff]  ;;  %v1603_v60 = vld [vmem:[#allocation9 + $0xb0] sm:$0xff]  ;;  %v1604_v61 = vld [vmem:[#allocation9 + $0xb8] sm:$0xff] }
 0x1c6   :  { %v2723_v6 = vpack.c.bf16 %v1340_v4, %v1338_v3  ;;  %v1586_v59 = vld [vmem:[#allocation9 + $0x28] sm:$0xff] }
 0x1c7   :  { %2426 = vmatpush1.bf16.msra.mxu0 %v2425_v7  ;;  %v1337_v7 = vld [vmem:[#allocation6 + $0x140] sm:$0xff]  ;;  %v1606_v3 = vld [vmem:[#allocation9 + $0xc8] sm:$0xff] }
 0x1c8   :  { %2682 = vmatpush1.bf16.msra.mxu1 %v2681_v8  ;;  %2684 = vmatprep.subr.bf16.mxu0 %v2683_v9  ;;  %v1339_v8 = vld [vmem:[#allocation6 + $0x150] sm:$0xff]  ;;  %v1342_v9 = vld [vmem:[#allocation6 + $0x168] sm:$0xff] }
 0x1c9   :  { %v2725_v11 = vpack.c.bf16 %v1339_v8, %v1337_v7  ;;  %v2727_v12 = vpack.c.bf16 %v1344_v10, %v1342_v9  ;;  %v1590_v7 = vld [vmem:[#allocation9 + $0x48] sm:$0xff]  ;;  %v1607_v8 = vld [vmem:[#allocation9 + $0xd0] sm:$0xff]  ;;  %v1608_v9 = vld [vmem:[#allocation9 + $0xd8] sm:$0xff] }
 0x1ca   :  { %1003 = vmatmul.mubr.f32.vlgmr.msra.gmra.mrb[0].mxu0 %v189_v14 }
 0x1cb   :  { %1287 = vmatmul.mubr.f32.vlgmr.msra.gmra.mrb[0].mxu1 %v189_v14  ;;  %2686 = vmatpush1.bf16.msra.mxu0 %v2685_v15  ;;  %v1343_v14 = vld [vmem:[#allocation6 + $0x170] sm:$0xff]  ;;  %v1346_v15 = vld [vmem:[#allocation6 + $0x188] sm:$0xff] }
 0x1cc   :  { %2688 = vmatprep.subr.bf16.mxu0 %v2687_v16  ;;  %v1348_v16 = vld [vmem:[#allocation6 + $0x198] sm:$0xff]  ;;  %v2729_v17 = vpack.c.bf16 %v1343_v14, %v1341_v13  ;;  %v1609_v14 = vld [vmem:[#allocation9 + $0xe0] sm:$0xff] }
 0x1cd   :  { %v2731_v18 = vpack.c.bf16 %v1348_v16, %v1346_v15  ;;  %v1592_v13 = vld [vmem:[#allocation9 + $0x58] sm:$0xff]  ;;  %v1610_v15 = vld [vmem:[#allocation9 + $0xe8] sm:$0xff] }
 0x1cf   :  { %2690 = vmatpush1.bf16.msra.mxu0 %v2689_v21  ;;  %v1350_v21 = vld [vmem:[#allocation6 + $0x1a8] sm:$0xff] }
 0x1d0   :  { %2692 = vmatprep.subr.bf16.mxu0 %v2691_v22  ;;  %v1352_v22 = vld [vmem:[#allocation6 + $0x1b8] sm:$0xff] }
 0x1d1   :  { %v2735_v24 = vpack.c.bf16 %v1352_v22, %v1350_v21  ;;  %v3470_v21 = vld [vmem:[#allocation4] sm:$0xf] }
 0x1d3   :  { %2694 = vmatpush1.bf16.msra.mxu0 %v2693_v27  ;;  %v1354_v27 = vld [vmem:[#allocation6 + $0x1c8] sm:$0xff] }
 0x1d4   :  { %2696 = vmatprep.subr.bf16.mxu0 %v2695_v28  ;;  %v1356_v28 = vld [vmem:[#allocation6 + $0x1d8] sm:$0xff] }
 0x1d5   :  { %v2739_v30 = vpack.c.bf16 %v1356_v28, %v1354_v27 }
 0x1d7   :  { %2698 = vmatpush1.bf16.msra.mxu0 %v2697_v33  ;;  %v2741_v33 = vpack.c.bf16 %v1355_v32, %v1353_v31  ;;  %v1361_v31 = vld [vmem:[#allocation6 + $0x200] sm:$0xff]  ;;  %v1363_v32 = vld [vmem:[#allocation6 + $0x210] sm:$0xff] }
 0x1d8   :  { %2700 = vmatprep.subr.bf16.mxu0 %v2699_v34  ;;  %v1358_v34 = vld [vmem:[#allocation6 + $0x1e8] sm:$0xff] }
 0x1d9   :  { %v2743_v36 = vpack.c.bf16 %v1360_v35, %v1358_v34  ;;  %v1366_v35 = vld [vmem:[#allocation6 + $0x228] sm:$0xff] }
 0x1db   :  { %2702 = vmatpush1.bf16.msra.mxu0 %v2701_v39  ;;  %v2745_v39 = vpack.c.bf16 %v1359_v38, %v1357_v37 }
 0x1dc   :  { %2704 = vmatprep.subr.bf16.mxu0 %v2703_v40  ;;  %v1362_v40 = vld [vmem:[#allocation6 + $0x208] sm:$0xff] }
 0x1dd   :  { %v2747_v42 = vpack.c.bf16 %v1364_v41, %v1362_v40 }
 0x1df   :  { %2706 = vmatpush1.bf16.msra.mxu0 %v2705_v45  ;;  %v1581_v45 = vld [vmem:[#allocation9] sm:$0xff] }
 0x1e0   :  { %2708 = vmatprep.subr.bf16.mxu0 %v2707_v46  ;;  %v2811_v46 = vpack.c.bf16 %v1598_v44, %v1597_v43  ;;  %v2813_v50 = vpack.c.bf16 %v1582_v47, %v1581_v45  ;;  %v1367_v43 = vld [vmem:[#allocation6 + $0x230] sm:$0xff]  ;;  %v1370_v45 = vld [vmem:[#allocation6 + $0x248] sm:$0xff] }
 0x1e2   :  { %2812 = vmatprep.subr.bf16.mxu1 %v2811_v46  ;;  %v1372_v46 = vld [vmem:[#allocation6 + $0x258] sm:$0xff] }
 0x1e3   :  { %2710 = vmatpush1.bf16.msra.mxu0 %v2709_v51  ;;  %v2815_v51 = vpack.c.bf16 %v1600_v49, %v1599_v48  ;;  %2814 = vmatpush3.bf16.msra.mxu1 %v2813_v50  ;;  %v2755_v48 = vpack.c.bf16 %v1372_v46, %v1370_v45  ;;  %v1369_v49 = vld [vmem:[#allocation6 + $0x240] sm:$0xff]  ;;  %v1371_v50 = vld [vmem:[#allocation6 + $0x250] sm:$0xff]  ;;  %v1410_v46 = vld [vmem:[#allocation6 + $0x388] sm:$0xff] }
 0x1e4   :  { %2712 = vmatprep.subr.bf16.mxu0 %v2711_v52  ;;  %v1583_v52 = vld [vmem:[#allocation9 + $0x10] sm:$0xff] }
 0x1e5   :  { %v2817_v56 = vpack.c.bf16 %v1584_v53, %v1583_v52  ;;  %2816 = vmatprep.subr.bf16.mxu1 %v2815_v51  ;;  %v1374_v51 = vld [vmem:[#allocation6 + $0x268] sm:$0xff]  ;;  %v1376_v52 = vld [vmem:[#allocation6 + $0x278] sm:$0xff]  ;;  %v2757_v53 = vpack.c.bf16 %v1371_v50, %v1369_v49  ;;  %v1407_v45 = vld [vmem:[#allocation6 + $0x370] sm:$0xff] }
 0x1e6   :  { %v1409_v50 = vld [vmem:[#allocation6 + $0x380] sm:$0xff] }
 0x1e7   :  { %2714 = vmatpush1.bf16.msra.mxu0 %v2713_v57  ;;  %v2819_v57 = vpack.c.bf16 %v1602_v55, %v1601_v54  ;;  %2818 = vmatpush3.bf16.msra.mxu1 %v2817_v56  ;;  %v2759_v54 = vpack.c.bf16 %v1376_v52, %v1374_v51  ;;  %v1373_v55 = vld [vmem:[#allocation6 + $0x260] sm:$0xff]  ;;  %v1375_v56 = vld [vmem:[#allocation6 + $0x270] sm:$0xff]  ;;  %v1414_v52 = vld [vmem:[#allocation6 + $0x3a8] sm:$0xff] }
 0x1e8   :  { %2716 = vmatprep.subr.bf16.mxu0 %v2715_v58  ;;  %v1585_v58 = vld [vmem:[#allocation9 + $0x20] sm:$0xff]  ;;  %v1411_v51 = vld [vmem:[#allocation6 + $0x390] sm:$0xff] }
 0x1e9   :  { %v2821_v62 = vpack.c.bf16 %v1586_v59, %v1585_v58  ;;  %2820 = vmatprep.subr.bf16.mxu1 %v2819_v57  ;;  %v1378_v57 = vld [vmem:[#allocation6 + $0x288] sm:$0xff]  ;;  %v1380_v58 = vld [vmem:[#allocation6 + $0x298] sm:$0xff]  ;;  %v2761_v59 = vpack.c.bf16 %v1375_v56, %v1373_v55  ;;  %v1413_v56 = vld [vmem:[#allocation6 + $0x3a0] sm:$0xff] }
 0x1eb   :  { %2718 = vmatpush1.bf16.msra.mxu0 %v2717_v63  ;;  %v2823_v63 = vpack.c.bf16 %v1604_v61, %v1603_v60  ;;  %2822 = vmatpush3.bf16.msra.mxu1 %v2821_v62  ;;  %v2763_v60 = vpack.c.bf16 %v1380_v58, %v1378_v57  ;;  %v1377_v61 = vld [vmem:[#allocation6 + $0x280] sm:$0xff]  ;;  %v1379_v62 = vld [vmem:[#allocation6 + $0x290] sm:$0xff]  ;;  %v1418_v58 = vld [vmem:[#allocation6 + $0x3c8] sm:$0xff] }
 0x1ec   :  { %2720 = vmatprep.subr.bf16.mxu0 %v2719_v0  ;;  %v1587_v0 = vld [vmem:[#allocation9 + $0x30] sm:$0xff] }
 0x1ed   :  { %v2825_v4 = vpack.c.bf16 %v1588_v1, %v1587_v0  ;;  %2824 = vmatprep.subr.bf16.mxu1 %v2823_v63  ;;  %v1382_v63 = vld [vmem:[#allocation6 + $0x2a8] sm:$0xff]  ;;  %v1384_v0 = vld [vmem:[#allocation6 + $0x2b8] sm:$0xff]  ;;  %v2765_v1 = vpack.c.bf16 %v1379_v62, %v1377_v61  ;;  %v1415_v57 = vld [vmem:[#allocation6 + $0x3b0] sm:$0xff] }
 0x1ef   :  { %2722 = vmatpush1.bf16.msra.mxu0 %v2721_v5  ;;  %v2827_v5 = vpack.c.bf16 %v1606_v3, %v1605_v2  ;;  %2826 = vmatpush3.bf16.msra.mxu1 %v2825_v4  ;;  %v2767_v2 = vpack.c.bf16 %v1384_v0, %v1382_v63  ;;  %v1381_v3 = vld [vmem:[#allocation6 + $0x2a0] sm:$0xff]  ;;  %v1383_v4 = vld [vmem:[#allocation6 + $0x2b0] sm:$0xff] }
 0x1f0   :  { %2724 = vmatprep.subr.bf16.mxu0 %v2723_v6  ;;  %v1589_v6 = vld [vmem:[#allocation9 + $0x40] sm:$0xff]  ;;  %v1419_v0 = vld [vmem:[#allocation6 + $0x3d0] sm:$0xff] }
 0x1f1   :  { %v2829_v10 = vpack.c.bf16 %v1590_v7, %v1589_v6  ;;  %2828 = vmatprep.subr.bf16.mxu1 %v2827_v5  ;;  %v1386_v5 = vld [vmem:[#allocation6 + $0x2c8] sm:$0xff]  ;;  %v1388_v6 = vld [vmem:[#allocation6 + $0x2d8] sm:$0xff]  ;;  %v2769_v7 = vpack.c.bf16 %v1383_v4, %v1381_v3  ;;  %v1417_v63 = vld [vmem:[#allocation6 + $0x3c0] sm:$0xff] }
 0x1f2   :  { %v2805_v3 = vpack.c.bf16 %v1419_v0, %v1417_v63  ;;  %v1696_v63 = vld [vmem:[#allocation12 + $0x28] sm:$0xff] }
 0x1f3   :  { %2726 = vmatpush1.bf16.msra.mxu0 %v2725_v11  ;;  %v2831_v11 = vpack.c.bf16 %v1608_v9, %v1607_v8  ;;  %2830 = vmatpush3.bf16.msra.mxu1 %v2829_v10  ;;  %v2771_v8 = vpack.c.bf16 %v1388_v6, %v1386_v5  ;;  %v1385_v9 = vld [vmem:[#allocation6 + $0x2c0] sm:$0xff]  ;;  %v1387_v10 = vld [vmem:[#allocation6 + $0x2d0] sm:$0xff] }
 0x1f4   :  { %2728 = vmatprep.subr.bf16.mxu0 %v2727_v12  ;;  %v1591_v12 = vld [vmem:[#allocation9 + $0x50] sm:$0xff]  ;;  %v1421_v6 = vld [vmem:[#allocation6 + $0x3e0] sm:$0xff] }
 0x1f5   :  { %v2833_v16 = vpack.c.bf16 %v1592_v13, %v1591_v12  ;;  %2832 = vmatprep.subr.bf16.mxu1 %v2831_v11  ;;  %v1390_v11 = vld [vmem:[#allocation6 + $0x2e8] sm:$0xff]  ;;  %v1392_v12 = vld [vmem:[#allocation6 + $0x2f8] sm:$0xff]  ;;  %v2773_v13 = vpack.c.bf16 %v1387_v10, %v1385_v9 }
 0x1f7   :  { %2730 = vmatpush1.bf16.msra.mxu0 %v2729_v17  ;;  %v2835_v17 = vpack.c.bf16 %v1610_v15, %v1609_v14  ;;  %2834 = vmatpush3.bf16.msra.mxu1 %v2833_v16  ;;  %v2775_v14 = vpack.c.bf16 %v1392_v12, %v1390_v11  ;;  %v1389_v15 = vld [vmem:[#allocation6 + $0x2e0] sm:$0xff]  ;;  %v1391_v16 = vld [vmem:[#allocation6 + $0x2f0] sm:$0xff] }
 0x1f8   :  { %2732 = vmatprep.subr.bf16.mxu0 %v2731_v18  ;;  %v705_v18 = vlaneseq  ;;  %v1593_v11 = vld [vmem:[#allocation9 + $0x60] sm:$0xff]  ;;  %v1594_v12 = vld [vmem:[#allocation9 + $0x68] sm:$0xff] }
 0x1f9   :  { %2836 = vmatprep.subr.bf16.mxu1 %v2835_v17  ;;  %v1394_v17 = vld [vmem:[#allocation6 + $0x308] sm:$0xff] }
 0x1fa   :  { %v3467_v19 = vshrl.u32 %v705_v18, 7  ;;  %v1396_v18 = vld [vmem:[#allocation6 + $0x318] sm:$0xff] }
 0x1fb   :  { %2734 = vmatpush1.bf16.msra.mxu0 %v2733_v23 }
 0x1fc   :  { %2736 = vmatprep.subr.bf16.mxu0 %v2735_v24  ;;  %v707_v20 = vsub.s32 0, %v3467_v19  ;;  %v711_v22 = vsub.s32 1, %v3467_v19  ;;  %v719_v23 = vsub.s32 3, %v3467_v19  ;;  %v715_v61 = vsub.s32 2, %v3467_v19  ;;  %v1712_v19 = vld [vmem:[#allocation13 + $0x20] sm:$0xff] }
 0x1fe   :  { %v708_v24 = vrot.slane %v3470_v21, %v707_v20  ;;  %v712_v25 = vrot.slane %v3470_v21, %v711_v22  ;;  %v720_v26 = vrot.slane %v3470_v21, %v719_v23  ;;  %v2777_v23 = vpack.c.bf16 %v1391_v16, %v1389_v15  ;;  %v1612_v15 = vld [vmem:[#allocation9 + $0xf8] sm:$0xff] }
 0x1ff   :  { %2738 = vmatpush1.bf16.msra.mxu0 %v2737_v29  ;;  %v716_v4 = vrot.slane %v3470_v21, %v715_v61  ;;  %v1595_v21 = vld [vmem:[#allocation9 + $0x70] sm:$0xff] }
 0x200   :  { %2740 = vmatprep.subr.bf16.mxu0 %v2739_v30 }
 0x203   :  { %2742 = vmatpush1.bf16.msra.mxu0 %v2741_v33 }
 0x204   :  { %2744 = vmatprep.subr.bf16.mxu0 %v2743_v36  ;;  %v1368_v36 = vld [vmem:[#allocation6 + $0x238] sm:$0xff] }
 0x205   :  { %v2751_v41 = vpack.c.bf16 %v1368_v36, %v1366_v35  ;;  %v1404_v35 = vld [vmem:[#allocation6 + $0x358] sm:$0xff] }
 0x207   :  { %2746 = vmatpush1.bf16.msra.mxu0 %v2745_v39  ;;  %v2749_v39 = vpack.c.bf16 %v1363_v32, %v1361_v31  ;;  %v1397_v32 = vld [vmem:[#allocation6 + $0x320] sm:$0xff] }
 0x208   :  { %2748 = vmatprep.subr.bf16.mxu0 %v2747_v42  ;;  %v1365_v42 = vld [vmem:[#allocation6 + $0x220] sm:$0xff] }
 0x209   :  { %v2753_v47 = vpack.c.bf16 %v1367_v43, %v1365_v42 }
 0x29d   :  { %v1004_v27 = vpop.f32.mrb[0].mxu0 }
 0x29e   :  { %v2915_v28 = vadd.f32 %v1004_v27, %v708_v24  ;;  %v3481_v29 = vpop.f32.mrb[0].mxu1  ;;  %v1006_v30 = vpop.f32.mrb[1].mxu0  ;;  %v2779_v24 = vpack.c.bf16 %v1396_v18, %v1394_v17  ;;  %v1398_v27 = vld [vmem:[#allocation6 + $0x328] sm:$0xff]  ;;  %v1596_v17 = vld [vmem:[#allocation9 + $0x78] sm:$0xff] }
 0x29f   :  { %v2916_v33 = vadd.f32 %v1006_v30, %v712_v25  ;;  %v1290_v34 = vpop.f32.mrb[1].mxu1  ;;  %v1393_v25 = vld [vmem:[#allocation6 + $0x300] sm:$0xff]  ;;  %v2917_v9 = vadd.f32 %v3481_v29, %v716_v4  ;;  %v2841_v18 = vpack.c.bf16 %v1596_v17, %v1595_v21 }
 0x2a0   :  { %v2918_v37 = vadd.f32 %v1290_v34, %v720_v26  ;;  %v1293_v40 = vmax.f32 %v2915_v28, 0.0  ;;  %v1395_v26 = vld [vmem:[#allocation6 + $0x310] sm:$0xff]  ;;  %v1400_v28 = vld [vmem:[#allocation6 + $0x338] sm:$0xff]  ;;  %v1402_v34 = vld [vmem:[#allocation6 + $0x348] sm:$0xff] }
 0x2a1   :  { %v1294_v38 = vmax.f32 %v2916_v33, 0.0  ;;  %v2781_v30 = vpack.c.bf16 %v1395_v26, %v1393_v25  ;;  %v2783_v31 = vpack.c.bf16 %v1400_v28, %v1398_v27  ;;  %v1399_v33 = vld [vmem:[#allocation6 + $0x330] sm:$0xff]  ;;  %v1295_v10 = vmax.f32 %v2917_v9, 0.0  ;;  %v1425_v29 = vld [vmem:[#allocation7] sm:$0x3]  ;;  %v1699_v4 = vld [vmem:[#allocation12 + $0x40] sm:$0xff] }
 0x2a2   :  { %v1296_v44 = vmax.f32 %v2918_v37, 0.0  ;;  %v2785_v36 = vpack.c.bf16 %v1399_v33, %v1397_v32  ;;  %v2787_v37 = vpack.c.bf16 %v1404_v35, %v1402_v34  ;;  %v1434_v25 = vrot.slane %v1425_v29, %v711_v22  ;;  %v1713_v22 = vld [vmem:[#allocation13 + $0x28] sm:$0xff]  ;;  %v1977_v21 = vld [vmem:[#allocation10] ss:$0 sm:$0xff] }
 0x2a3   :  { %1501 = vmatprep.mubr.f32.mxu0 %v1294_v38  ;;  %v1401_v38 = vld [vmem:[#allocation6 + $0x340] sm:$0xff] }
 0x2a4   :  { %1502 = vmatmul.mubr.f32.vlgmr.msra.gmra.mrb[2].mxu0 %v1293_v40  ;;  %v1406_v40 = vld [vmem:[#allocation6 + $0x368] sm:$0xff] }
 0x2a5   :  { %2750 = vmatpush1.bf16.msra.mxu0 %v2749_v39  ;;  %1572 = vmatprep.mubr.f32.mxu0 %v1296_v44  ;;  %v1403_v39 = vld [vmem:[#allocation6 + $0x350] sm:$0xff]  ;;  %v1405_v44 = vld [vmem:[#allocation6 + $0x360] sm:$0xff] }
 0x2a6   :  { %2752 = vmatprep.subr.bf16.mxu0 %v2751_v41  ;;  %v1408_v41 = vld [vmem:[#allocation6 + $0x378] sm:$0xff]  ;;  %v2789_v42 = vpack.c.bf16 %v1403_v39, %v1401_v38  ;;  %v2850_v39 = vpack.c.bf16 %v1713_v22, %v1712_v19  ;;  %v1882_v19 = vld [vmem:[#allocation16 + $0x48] sm:$0xff] }
 0x2a7   :  { %v2791_v43 = vpack.c.bf16 %v1408_v41, %v1406_v40  ;;  %v1714_v40 = vld [vmem:[#allocation13 + $0x30] sm:$0xff]  ;;  %v1715_v41 = vld [vmem:[#allocation13 + $0x38] sm:$0xff] }
 0x2a9   :  { %2754 = vmatpush1.bf16.msra.mxu0 %v2753_v47  ;;  %v1412_v47 = vld [vmem:[#allocation6 + $0x398] sm:$0xff] }
 0x2aa   :  { %2756 = vmatprep.subr.bf16.mxu0 %v2755_v48  ;;  %v2793_v48 = vpack.c.bf16 %v1407_v45, %v1405_v44  ;;  %v2795_v49 = vpack.c.bf16 %v1412_v47, %v1410_v46  ;;  %v1717_v44 = vld [vmem:[#allocation13 + $0x48] sm:$0xff]  ;;  %v1718_v46 = vld [vmem:[#allocation13 + $0x50] sm:$0xff]  ;;  %v1719_v47 = vld [vmem:[#allocation13 + $0x58] sm:$0xff] }
 0x2ad   :  { %2758 = vmatpush1.bf16.msra.mxu0 %v2757_v53  ;;  %v1416_v53 = vld [vmem:[#allocation6 + $0x3b8] sm:$0xff] }
 0x2ae   :  { %2760 = vmatprep.subr.bf16.mxu0 %v2759_v54  ;;  %v2797_v54 = vpack.c.bf16 %v1411_v51, %v1409_v50  ;;  %v2799_v55 = vpack.c.bf16 %v1416_v53, %v1414_v52  ;;  %v1721_v50 = vld [vmem:[#allocation13 + $0x68] sm:$0xff]  ;;  %v1722_v52 = vld [vmem:[#allocation13 + $0x70] sm:$0xff]  ;;  %v1723_v53 = vld [vmem:[#allocation13 + $0x78] sm:$0xff] }
 0x2b1   :  { %2762 = vmatpush1.bf16.msra.mxu0 %v2761_v59  ;;  %v1420_v59 = vld [vmem:[#allocation6 + $0x3d8] sm:$0xff] }
 0x2b2   :  { %2764 = vmatprep.subr.bf16.mxu0 %v2763_v60  ;;  %v2801_v60 = vpack.c.bf16 %v1415_v57, %v1413_v56  ;;  %v2803_v62 = vpack.c.bf16 %v1420_v59, %v1418_v58  ;;  %v1692_v56 = vld [vmem:[#allocation12 + $0x8] sm:$0xff]  ;;  %v1707_v57 = vld [vmem:[%s3527_s1] sm:$0xff]  ;;  %v1693_v59 = vld [vmem:[#allocation12 + $0x10] sm:$0xff] }
 0x2b5   :  { %2766 = vmatpush1.bf16.msra.mxu0 %v2765_v1  ;;  %v1422_v1 = vld [vmem:[#allocation6 + $0x3e8] sm:$0xff] }
 0x2b6   :  { %2768 = vmatprep.subr.bf16.mxu0 %v2767_v2  ;;  %v1424_v2 = vld [vmem:[#allocation6 + $0x3f8] sm:$0xff] }
 0x2b7   :  { %v2807_v5 = vpack.c.bf16 %v1424_v2, %v1422_v1  ;;  %v1697_v1 = vld [vmem:[#allocation12 + $0x30] sm:$0xff]  ;;  %v1698_v2 = vld [vmem:[#allocation12 + $0x38] sm:$0xff] }
 0x2b9   :  { %2770 = vmatpush1.bf16.msra.mxu0 %v2769_v7  ;;  %v1423_v7 = vld [vmem:[#allocation6 + $0x3f0] sm:$0xff] }
 0x2ba   :  { %2772 = vmatprep.subr.bf16.mxu0 %v2771_v8  ;;  %v2809_v8 = vpack.c.bf16 %v1423_v7, %v1421_v6  ;;  %v1701_v7 = vld [vmem:[#allocation12 + $0x50] sm:$0xff] }
 0x2bd   :  { %2774 = vmatpush1.bf16.msra.mxu0 %v2773_v13  ;;  %v2837_v13 = vpack.c.bf16 %v1594_v12, %v1593_v11  ;;  %v1704_v11 = vld [vmem:[#allocation12 + $0x68] sm:$0xff] }
 0x2be   :  { %2776 = vmatprep.subr.bf16.mxu0 %v2775_v14  ;;  %v1611_v14 = vld [vmem:[#allocation9 + $0xf0] sm:$0xff] }
 0x2bf   :  { %2838 = vmatpush3.bf16.msra.mxu1 %v2837_v13  ;;  %v2839_v16 = vpack.c.bf16 %v1612_v15, %v1611_v14  ;;  %v1705_v13 = vld [vmem:[#allocation12 + $0x70] sm:$0xff]  ;;  %v1706_v14 = vld [vmem:[#allocation12 + $0x78] sm:$0xff] }
 0x2c0   :  { %v2889_v15 = vpack.c.bf16 %v1706_v14, %v1705_v13 }
 0x2c1   :  { %2778 = vmatpush1.bf16.msra.mxu0 %v2777_v23  ;;  %2840 = vmatprep.subr.bf16.mxu1 %v2839_v16  ;;  %v3226_v23 = vmov 0.0|0.0  }
 0x2c2   :  { %2780 = vmatprep.subr.bf16.mxu0 %v2779_v24  ;;  %v1430_v24 = vrot.slane %v1425_v29, %v707_v20  ;;  %v3228_v20 = vmov 0.0   ;;  %v1873_v29 = vld [vmem:[#allocation16] sm:$0xff] }
 0x2c3   :  { %2842 = vmatpush3.bf16.msra.mxu1 %v2841_v18 }
 0x2c4   :  { %2843 = vmatprep.subr.bf16.mxu1 %v3226_v23 }
 0x2c5   :  { %2782 = vmatpush1.bf16.msra.mxu0 %v2781_v30  ;;  %v1708_v30 = vld [vmem:[#allocation13] sm:$0xff] }
 0x2c6   :  { %2784 = vmatprep.subr.bf16.mxu0 %v2783_v31  ;;  %v1709_v31 = vld [vmem:[#allocation13 + $0x8] sm:$0xff] }
 0x2c7   :  { %v2844_v34 = vpack.c.bf16 %v1709_v31, %v1708_v30  ;;  %v1876_v30 = vld [vmem:[#allocation16 + $0x18] sm:$0xff] }
 0x2c9   :  { %2786 = vmatpush1.bf16.msra.mxu0 %v2785_v36  ;;  %v1710_v36 = vld [vmem:[#allocation13 + $0x10] sm:$0xff] }
 0x2ca   :  { %2788 = vmatprep.subr.bf16.mxu0 %v2787_v37  ;;  %v1711_v37 = vld [vmem:[#allocation13 + $0x18] sm:$0xff] }
 0x2cb   :  { %v2847_v38 = vpack.c.bf16 %v1711_v37, %v1710_v36  ;;  %v1880_v36 = vld [vmem:[#allocation16 + $0x38] sm:$0xff] }
 0x2cd   :  { %2790 = vmatpush1.bf16.msra.mxu0 %v2789_v42  ;;  %v2853_v42 = vpack.c.bf16 %v1715_v41, %v1714_v40 }
 0x2ce   :  { %2792 = vmatprep.subr.bf16.mxu0 %v2791_v43  ;;  %v1716_v43 = vld [vmem:[#allocation13 + $0x40] sm:$0xff] }
 0x2cf   :  { %v2856_v45 = vpack.c.bf16 %v1717_v44, %v1716_v43  ;;  %v1885_v43 = vld [vmem:[#allocation16 + $0x60] sm:$0xff]  ;;  %v1886_v44 = vld [vmem:[#allocation16 + $0x68] sm:$0xff] }
 0x2d1   :  { %2794 = vmatpush1.bf16.msra.mxu0 %v2793_v48  ;;  %v2859_v48 = vpack.c.bf16 %v1719_v47, %v1718_v46  ;;  %v1887_v46 = vld [vmem:[#allocation16 + $0x70] sm:$0xff]  ;;  %v1888_v47 = vld [vmem:[#allocation16 + $0x78] sm:$0xff] }
 0x2d2   :  { %2796 = vmatprep.subr.bf16.mxu0 %v2795_v49  ;;  %v1720_v49 = vld [vmem:[#allocation13 + $0x60] sm:$0xff] }
 0x2d3   :  { %v2862_v51 = vpack.c.bf16 %v1721_v50, %v1720_v49  ;;  %v1978_v50 = vld [vmem:[#allocation15] ss:$0 sm:$0xff] }
 0x2d5   :  { %2798 = vmatpush1.bf16.msra.mxu0 %v2797_v54  ;;  %v2865_v54 = vpack.c.bf16 %v1723_v53, %v1722_v52 }
 0x2d6   :  { %2800 = vmatprep.subr.bf16.mxu0 %v2799_v55  ;;  %v1691_v55 = vld [vmem:[#allocation12] sm:$0xff] }
 0x2d7   :  { %v2868_v58 = vpack.c.bf16 %v1692_v56, %v1691_v55  ;;  %v1979_v55 = vld [vmem:[#allocation18] ss:$0 sm:$0xff] }
 0x2d9   :  { %2802 = vmatpush1.bf16.msra.mxu0 %v2801_v60  ;;  %v1694_v60 = vld [vmem:[#allocation12 + $0x18] sm:$0xff] }
 0x2da   :  { %2804 = vmatprep.subr.bf16.mxu0 %v2803_v62  ;;  %v2871_v61 = vpack.c.bf16 %v1694_v60, %v1693_v59  ;;  %v1695_v62 = vld [vmem:[#allocation12 + $0x20] sm:$0xff] }
 0x2db   :  { %v2874_v0 = vpack.c.bf16 %v1696_v63, %v1695_v62 }
 0x2dd   :  { %2806 = vmatpush1.bf16.msra.mxu0 %v2805_v3  ;;  %v2877_v3 = vpack.c.bf16 %v1698_v2, %v1697_v1 }
 0x2de   :  { %2808 = vmatprep.subr.bf16.mxu0 %v2807_v5  ;;  %v1700_v5 = vld [vmem:[#allocation12 + $0x48] sm:$0xff] }
 0x2df   :  { %v2880_v6 = vpack.c.bf16 %v1700_v5, %v1699_v4 }
 0x2e1   :  { %2810 = vmatpush1.bf16.msra.mxu0 %v2809_v8  ;;  %v1702_v8 = vld [vmem:[#allocation12 + $0x58] sm:$0xff] }
 0x2e2   :  { %v2883_v9 = vpack.c.bf16 %v1702_v8, %v1701_v7 }
 0x2e4   :  { %1573 = vmatmul.mubr.f32.vlgmr.msra.gmra.mrb[2].mxu0 %v1295_v10  ;;  %v1703_v10 = vld [vmem:[#allocation12 + $0x60] sm:$0xff] }
 0x2e5   :  { %v2886_v12 = vpack.c.bf16 %v1704_v11, %v1703_v10 }
 0x3b7   :  { %v1574_v26 = vpop.f32.mrb[2].mxu0 }
 0x3b8   :  { %v2919_v27 = vadd.f32 %v1574_v26, %v1430_v24  ;;  %v1576_v28 = vpop.f32.mrb[3].mxu0  ;;  %v1874_v24 = vld [vmem:[#allocation16 + $0x8] sm:$0xff] }
 0x3b9   :  { %v2920_v32 = vadd.f32 %v1576_v28, %v1434_v25  ;;  %v2892_v26 = vpack.c.bf16 %v1874_v24, %v1873_v29  ;;  %v1875_v28 = vld [vmem:[#allocation16 + $0x10] sm:$0xff] }
 0x3ba   :  { %v1579_v35 = vmax.f32 %v2919_v27, 0.0  ;;  %v2895_v31 = vpack.c.bf16 %v1876_v30, %v1875_v28 }
 0x3bb   :  { %v1580_v33 = vmax.f32 %v2920_v32, 0.0  ;;  %v1877_v32 = vld [vmem:[#allocation16 + $0x20] sm:$0xff] }
 0x3bd   :  { %1684 = vmatprep.mubr.f32.mxu1 %v1580_v33  ;;  %v1878_v33 = vld [vmem:[#allocation16 + $0x28] sm:$0xff] }
 0x3be   :  { %1685 = vmatmul.mubr.f32.vlgmr.msra.gmra.mrb[2].mxu1 %v1579_v35  ;;  %v1879_v35 = vld [vmem:[#allocation16 + $0x30] sm:$0xff] }
 0x3bf   :  { %2845 = vmatpush3.bf16.msra.mxu1 %v2844_v34  ;;  %2098 = vmatprep.mubr.msk.f32.mxu1 %vm3227_vm0, %v3228_v20  ;;  %v2898_v34 = vpack.c.bf16 %v1878_v33, %v1877_v32  ;;  %v2901_v37 = vpack.c.bf16 %v1880_v36, %v1879_v35 }
 0x3c0   :  { %2846 = vmatprep.subr.bf16.mxu1 %v3226_v23 }
 0x3c3   :  { %2848 = vmatpush3.bf16.msra.mxu1 %v2847_v38  ;;  %v1881_v38 = vld [vmem:[#allocation16 + $0x40] sm:$0xff] }
 0x3c4   :  { %2849 = vmatprep.subr.bf16.mxu1 %v3226_v23  ;;  %v2904_v22 = vpack.c.bf16 %v1882_v19, %v1881_v38 }
 0x3c7   :  { %2851 = vmatpush3.bf16.msra.mxu1 %v2850_v39  ;;  %v1884_v39 = vld [vmem:[#allocation16 + $0x58] sm:$0xff] }
 0x3c8   :  { %2852 = vmatprep.subr.bf16.mxu1 %v3226_v23 }
 0x3cb   :  { %2854 = vmatpush3.bf16.msra.mxu1 %v2853_v42 }
 0x3cc   :  { %2855 = vmatprep.subr.bf16.mxu1 %v3226_v23 }
 0x3cf   :  { %2857 = vmatpush3.bf16.msra.mxu1 %v2856_v45  ;;  %v2910_v45 = vpack.c.bf16 %v1886_v44, %v1885_v43 }
 0x3d0   :  { %2858 = vmatprep.subr.bf16.mxu1 %v3226_v23 }
 0x3d3   :  { %2860 = vmatpush3.bf16.msra.mxu1 %v2859_v48  ;;  %v2913_v48 = vpack.c.bf16 %v1888_v47, %v1887_v46 }
 0x3d4   :  { %2861 = vmatprep.subr.bf16.mxu1 %v3226_v23 }
 0x3d7   :  { %2863 = vmatpush3.bf16.msra.mxu1 %v2862_v51 }
 0x3d8   :  { %2864 = vmatprep.subr.bf16.mxu1 %v3226_v23 }
 0x3db   :  { %2866 = vmatpush3.bf16.msra.mxu1 %v2865_v54 }
 0x3dc   :  { %2867 = vmatprep.subr.bf16.mxu1 %v3226_v23 }
 0x3de   :  { %2099 = vmatmul.mubr.f32.vlgmr.msra.gmra.mrb[4].mxu1 %v1707_v57 }
 0x3df   :  { %2869 = vmatpush3.bf16.msra.mxu1 %v2868_v58  ;;  %2133 = vmatprep.mubr.msk.f32.mxu1 %vm3227_vm0, %v3228_v20 }
 0x3e0   :  { %2870 = vmatprep.subr.bf16.mxu1 %v3226_v23 }
 0x3e3   :  { %2872 = vmatpush3.bf16.msra.mxu1 %v2871_v61 }
 0x3e4   :  { %2873 = vmatprep.subr.bf16.mxu1 %v3226_v23 }
 0x3e7   :  { %2875 = vmatpush3.bf16.msra.mxu1 %v2874_v0 }
 0x3e8   :  { %2876 = vmatprep.subr.bf16.mxu1 %v3226_v23 }
 0x3eb   :  { %2878 = vmatpush3.bf16.msra.mxu1 %v2877_v3 }
 0x3ec   :  { %2879 = vmatprep.subr.bf16.mxu1 %v3226_v23 }
 0x3ef   :  { %2881 = vmatpush3.bf16.msra.mxu1 %v2880_v6 }
 0x3f0   :  { %2882 = vmatprep.subr.bf16.mxu1 %v3226_v23 }
 0x3f3   :  { %2884 = vmatpush3.bf16.msra.mxu1 %v2883_v9 }
 0x3f4   :  { %2885 = vmatprep.subr.bf16.mxu1 %v3226_v23 }
 0x3f7   :  { %2887 = vmatpush3.bf16.msra.mxu1 %v2886_v12 }
 0x3f8   :  { %2888 = vmatprep.subr.bf16.mxu1 %v3226_v23 }
 0x3fb   :  { %2890 = vmatpush3.bf16.msra.mxu1 %v2889_v15 }
 0x3fc   :  { %2891 = vmatprep.subr.bf16.mxu1 %v3226_v23 }
 0x491   :  { %v2012_v16 = vpop.f32.mrb[2].mxu1 }
 0x492   :  { %v2013_v17 = vpop.f32.mrb[3].mxu1 }
 0x493   :  { %v2014_v18 = vadd.f32 %v2013_v17, %v2012_v16 }
 0x495   :  { %v1687_v25 = vadd.f32 %v2014_v18, %v1977_v21 }
 0x497   :  { %v1690_v27 = vmax.f32 %v1687_v25, 0.0 }
 0x499   :  { %2134 = vmatmul.mubr.f32.vlgmr.msra.gmra.mrb[6].mxu1 %v1690_v27 }
 0x49a   :  { %2893 = vmatpush3.bf16.msra.mxu1 %v2892_v26  ;;  %2168 = vmatprep.mubr.msk.f32.mxu1 %vm3227_vm0, %v3228_v20  ;;  %v1883_v20 = vld [vmem:[#allocation16 + $0x50] sm:$0xff] }
 0x49b   :  { %2894 = vmatprep.subr.bf16.mxu1 %v3226_v23  ;;  %v2907_v40 = vpack.c.bf16 %v1884_v39, %v1883_v20 }
 0x49e   :  { %2896 = vmatpush3.bf16.msra.mxu1 %v2895_v31 }
 0x49f   :  { %2897 = vmatprep.subr.bf16.mxu1 %v3226_v23 }
 0x4a2   :  { %2899 = vmatpush3.bf16.msra.mxu1 %v2898_v34 }
 0x4a3   :  { %2900 = vmatprep.subr.bf16.mxu1 %v3226_v23 }
 0x4a6   :  { %2902 = vmatpush3.bf16.msra.mxu1 %v2901_v37 }
 0x4a7   :  { %2903 = vmatprep.subr.bf16.mxu1 %v3226_v23 }
 0x4aa   :  { %2905 = vmatpush3.bf16.msra.mxu1 %v2904_v22 }
 0x4ab   :  { %2906 = vmatprep.subr.bf16.mxu1 %v3226_v23 }
 0x4ae   :  { %2908 = vmatpush3.bf16.msra.mxu1 %v2907_v40 }
 0x4af   :  { %2909 = vmatprep.subr.bf16.mxu1 %v3226_v23 }
 0x4b1   :  { %v1790_v41 = vpop.f32.mrb[4].mxu1 }
 0x4b2   :  { %v2100_v42 = vpop.f32.mrb[5].mxu1  ;;  %2911 = vmatpush3.bf16.msra.mxu1 %v2910_v45 }
 0x4b3   :  { %2912 = vmatprep.subr.bf16.mxu1 %v3226_v23 }
 0x4b6   :  { %2914 = vmatpush3.bf16.msra.mxu1 %v2913_v48 }
 0x56c   :  { %v1860_v49 = vpop.f32.mrb[6].mxu1 }
 0x56d   :  { %v1861_v51 = vadd.f32 %v1860_v49, %v1790_v41  ;;  %v2135_v52 = vpop.f32.mrb[7].mxu1 }
 0x56f   :  { %v1871_v53 = vadd.f32 %v1978_v50, %v1861_v51 }
 0x571   :  { %v1872_v54 = vmax.f32 %v1871_v53, 0.0 }
 0x573   :  { %2169 = vmatmul.mubr.f32.vlgmr.msra.gmra.mrb[8].mxu1 %v1872_v54 }
 0x646   :  { %v1962_v56 = vpop.f32.mrb[8].mxu1 }
 0x647   :  { %v1963_v57 = vadd.f32 %v1979_v55, %v1962_v56  ;;  %v2170_v58 = vpop.f32.mrb[9].mxu1 }
 0x649   :  { %1966 = vst [vmem:[%s3539_s13] sm:$0xff] %v1963_v57 }
 0x64a   :  { %1971 = vsyncpa [#allocation3], 1 }
 0x64b   :  { %1972 = vsyncpa [#allocation5], 1 }
 0x64c   :  { %1973 = vsyncpa [#allocation8], 1 }
 0x64d   :  { %1974 = vsyncpa [#allocation11], 1 }
 0x64e   :  { %1975 = vsyncpa [#allocation14], 1 }
 0x64f   :  { %1976 = vsyncpa [#allocation17], 1 }

</bundles_post_ra>
